<compile_context>
chip_gen: v7x
topology: tpu7x:2x2x1
jax: 0.10.0
libtpu: 0.0.40
codegen_flags: <defaults>
</compile_context>

<pallas_src>
import math

import jax
import jax.numpy as jnp
from jax import lax
from jax.experimental import pallas as pl
from jax.experimental.pallas import tpu as pltpu


# ----------------------------------------------------------------------------
# Fused kernel:  BN(scale,shift) -> ReLU -> Conv3d (+bias), one sample per step
# ----------------------------------------------------------------------------
def _make_fused_kernel(d, h, w, c_in, c_out, k, pad):
    wc = w * c_in
    taps = [(kd, kh) for kd in range(k) for kh in range(k)]  # kw folded into weights

    def kernel(x_ref, scale_ref, shift_ref, w_ref, bias_ref, o_ref,
               xpad_ref, col_ref):
        # x_ref: (D*H, W*Cin) -- one sample, channels-last slab.
        # Fused BN scale/shift + ReLU in a single elementwise pass.
        a = jnp.maximum(x_ref[...] * scale_ref[...] + shift_ref[...], 0.0)

        # Zero only the D/H halo each step; the interior is fully overwritten.
        if pad > 0:
            xpad_ref[:pad, :, :] = jnp.zeros((pad, h + 2 * pad, wc), xpad_ref.dtype)
            xpad_ref[d + pad:, :, :] = jnp.zeros((pad, h + 2 * pad, wc), xpad_ref.dtype)
            xpad_ref[pad:d + pad, :pad, :] = jnp.zeros((d, pad, wc), xpad_ref.dtype)
            xpad_ref[pad:d + pad, h + pad:, :] = jnp.zeros((d, pad, wc), xpad_ref.dtype)
        xpad_ref[pad:pad + d, pad:pad + h, :] = a.reshape(d, h, wc)

        # im2col over only the k^2 (kd,kh) taps.  Window starts are full-lane
        # slices (no kw*Cin offsets); the f32->bf16 cast fuses into each copy.
        for t, (kd, kh) in enumerate(taps):
            win = xpad_ref[kd:kd + d, kh:kh + h, :].reshape(d * h, wc)
            col_ref[:, t * wc:(t + 1) * wc] = win.astype(col_ref.dtype)

        # One deep MXU dot (K = k^2 * W * Cin), f32 accumulation inside the MXU,
        # bias epilogue, exactly one write of the output block.
        acc = jnp.dot(col_ref[...], w_ref[...], preferred_element_type=jnp.float32)
        o_ref[...] = (acc + bias_ref[...]).astype(o_ref.dtype)

    return kernel


def fused_bn_relu_conv3d(x2, scale_t, shift_t, w_stack, bias_t, *,
                         n, d, h, w, c_in, c_out, k, pad, out_dtype=jnp.float32):
    """x2: [N*D*H, W*Cin] f32 slab.  Returns [N*D*H, W*Cout] in out_dtype."""
    assert d + 2 * pad - k + 1 == d, "conv must be size-preserving (stride 1)"
    wc, wo = w * c_in, w * c_out
    kernel = _make_fused_kernel(d, h, w, c_in, c_out, k, pad)

    return pl.pallas_call(
        kernel,
        out_shape=jax.ShapeDtypeStruct((n * d * h, wo), out_dtype),
        grid=(n,),  # one sample per grid step; "parallel" -> both TCs on v7x
        in_specs=[
            pl.BlockSpec((d * h, wc), lambda i: (i, 0)),
            # grid-invariant operands (pl.Buffered(1) would halve their VMEM,
            # irrelevant at this size so default buffering is kept):
            pl.BlockSpec((1, wc), lambda i: (0, 0)),
            pl.BlockSpec((1, wc), lambda i: (0, 0)),
            pl.BlockSpec((k * k * wc, wo), lambda i: (0, 0)),
            pl.BlockSpec((1, wo), lambda i: (0, 0)),
        ],
        out_specs=pl.BlockSpec((d * h, wo), lambda i: (i, 0)),
        scratch_shapes=[
            pltpu.VMEM((d + 2 * pad, h + 2 * pad, wc), jnp.float32),  # padded sample
            pltpu.VMEM((d * h, k * k * wc), jnp.bfloat16),            # im2col slab
        ],
        compiler_params=pltpu.CompilerParams(
            dimension_semantics=("parallel",),
            vmem_limit_bytes=32 * 1024 * 1024),
    )(x2, scale_t, shift_t, w_stack, bias_t)


# ----------------------------------------------------------------------------
# Parameter construction: deterministic Conv3d init + spectral-norm rescale +
# one-time pre-reshape of the weights into stacked banded (Toeplitz) taps.
# ----------------------------------------------------------------------------
def _l2n(x, eps=1e-12):
    return x / (jnp.sqrt(jnp.sum(x * x)) + eps)


def spectral_scale_fc(w2d, coeff, n_iter, key):
    u = _l2n(jax.random.normal(key, (w2d.shape[0],), jnp.float32))
    v = None
    for _ in range(max(n_iter, 1)):
        v = _l2n(w2d.T @ u)
        u = _l2n(w2d @ v)
    sigma = u @ (w2d @ v)
    return 1.0 / jnp.maximum(1.0, sigma / coeff)


def spectral_scale_conv(w, coeff, input_dim, n_iter, key, pad):
    # TODO(synk): the power iteration stays in plain JAX (jax.vjp of lax.conv);
    # it runs once at parameter-build time, never in the forward pass.
    def conv_fn(v):
        return lax.conv_general_dilated(
            v, w, window_strides=(1, 1, 1), padding=[(pad, pad)] * 3,
            dimension_numbers=("NCDHW", "OIDHW", "NCDHW"))

    v = jnp.zeros((1,) + tuple(input_dim), jnp.float32)
    u = _l2n(jax.random.normal(key, conv_fn(v).shape, jnp.float32))
    for _ in range(max(n_iter, 1)):
        _, vjp = jax.vjp(conv_fn, v)
        v = _l2n(vjp(u)[0])
        u = _l2n(conv_fn(v))
    sigma = jnp.sum(u * conv_fn(v))
    return 1.0 / jnp.maximum(1.0, sigma / coeff)


def _banded_taps(w_sn, input_size, pad):
    """(Cout,Cin,k,k,k) conv weight -> (k^2*W*Cin, W*Cout) bf16 stacked banded taps.

    Row index = (kd*k+kh)*W*Cin + w_in*Cin + ci, col index = w_out*Cout + co.
    Entry = w_sn[co, ci, kd, kh, w_in - w_out + pad] when that kw is in range,
    else 0: the kw taps and the W zero-padding live inside the band, so the
    kernel only shifts windows along D and H.
    """
    c_out, c_in, k, _, _ = w_sn.shape
    W = input_size
    wt = jnp.transpose(w_sn, (2, 3, 4, 1, 0)).reshape(k * k, k, c_in, c_out)
    kw_idx = jnp.arange(W)[:, None] - jnp.arange(W)[None, :] + pad   # (w_in, w_out)
    valid = (kw_idx >= 0) & (kw_idx < k)
    banded = wt[:, jnp.clip(kw_idx, 0, k - 1)]            # (k^2, w_in, w_out, ci, co)
    banded = jnp.where(valid[None, :, :, None, None], banded, 0.0)
    banded = jnp.transpose(banded, (0, 1, 3, 2, 4))       # (k^2, w_in, ci, w_out, co)
    return banded.reshape(k * k * W * c_in, W * c_out).astype(jnp.bfloat16)


def build_params(key, *, c_in, c_out, kernel_size, padding, input_size,
                 bias=True, coeff=3.0, n_power_iterations=1):
    k = kernel_size
    kw_, kb_, ks_ = jax.random.split(key, 3)
    fan_in = c_in * k ** 3
    bound = 1.0 / math.sqrt(fan_in)
    w = jax.random.uniform(kw_, (c_out, c_in, k, k, k), jnp.float32, -bound, bound)
    b = (jax.random.uniform(kb_, (c_out,), jnp.float32, -bound, bound)
         if bias else jnp.zeros((c_out,), jnp.float32))

    if k == 1:
        scale = spectral_scale_fc(w.reshape(c_out, -1), coeff, n_power_iterations, ks_)
    else:
        scale = spectral_scale_conv(
            w, coeff, (c_in, input_size, input_size, input_size),
            n_power_iterations, ks_, padding)
    w_sn = w * scale

    params = dict(
        w_stack=_banded_taps(w_sn, input_size, padding),   # (k^2*W*Cin, W*Cout) bf16
        bias_t=jnp.tile(b, (input_size,)).reshape(
            1, input_size * c_out).astype(jnp.float32),     # (1, W*Cout) f32
        gamma=jnp.ones((c_in,), jnp.float32),
        beta=jnp.zeros((c_in,), jnp.float32),
        running_var=jnp.ones((c_in,), jnp.float32),          # fresh-init running stats
    )
    ref = dict(w_sn=w_sn, b=b)   # f32 copies for the reference check
    return params, ref


# ----------------------------------------------------------------------------
# Forward pass
# ----------------------------------------------------------------------------
def make_forward(*, c_in, c_out, kernel_size, padding, coeff=3.0, eps=1e-5,
                 use_bn=True, out_dtype=jnp.float32):
    """All configuration is static Python, closed over here."""
    k = kernel_size

    def forward(x_ncdhw, params):
        n, cx, d, h, w = x_ncdhw.shape
        assert cx == c_in
        # NCDHW -> channels-last slab [N*D*H, W*C] consumed by the fused kernel.
        # TODO(synk): for a chain of PreAct blocks, keep activations in this slab
        # layout across layers instead of transposing at every module boundary.
        x_cl = jnp.transpose(x_ncdhw, (0, 2, 3, 4, 1)).astype(jnp.float32)
        x2 = x_cl.reshape(n * d * h, w * c_in)

        if use_bn:
            # Batch stats as plain jnp reductions: XLA fuses them into the layout
            # transpose above, so there is no extra Pallas launch / HBM pass.
            xc = x_cl.reshape(-1, c_in)
            mean = jnp.mean(xc, axis=0)
            var = jnp.var(xc, axis=0)            # two-pass: no E[x^2]-E[x]^2 cancellation
            # SpectralBatchNorm Lipschitz clamp on gamma (uses running stats).
            lipschitz = jnp.max(jnp.abs(params["gamma"]) *
                                lax.rsqrt(params["running_var"] + eps))
            factor = jnp.maximum(lipschitz / coeff, 1.0)
            g = params["gamma"] / factor
            bn_scale = g * lax.rsqrt(var + eps)
            bn_shift = params["beta"] - mean * bn_scale
        else:
            bn_scale = jnp.ones((c_in,), jnp.float32)
            bn_shift = jnp.zeros((c_in,), jnp.float32)

        scale_t = jnp.tile(bn_scale, (w,)).reshape(1, w * c_in)
        shift_t = jnp.tile(bn_shift, (w,)).reshape(1, w * c_in)

        y2 = fused_bn_relu_conv3d(
            x2, scale_t, shift_t, params["w_stack"], params["bias_t"],
            n=n, d=d, h=h, w=w, c_in=c_in, c_out=c_out, k=k, pad=padding,
            out_dtype=out_dtype)

        y = y2.reshape(n, d, h, w, c_out)
        return jnp.transpose(y, (0, 4, 1, 2, 3))   # -> NCDHW

    return forward


# ----------------------------------------------------------------------------
# Pure-JAX reference (correctness check only)
# ----------------------------------------------------------------------------
def reference_forward(x_ncdhw, w_sn, b, gamma, beta, running_var, *, padding,
                      coeff=3.0, eps=1e-5, use_bn=True):
    x = x_ncdhw.astype(jnp.float32)
    if use_bn:
        mean = x.mean(axis=(0, 2, 3, 4))
        var = x.var(axis=(0, 2, 3, 4))
        lipschitz = jnp.max(jnp.abs(gamma) * lax.rsqrt(running_var + eps))
        factor = jnp.maximum(lipschitz / coeff, 1.0)
        g = gamma / factor
        sc = g * lax.rsqrt(var + eps)
        x = (x * sc[None, :, None, None, None]
             + (beta - mean * sc)[None, :, None, None, None])
    a = jnp.maximum(x, 0.0)
    y = lax.conv_general_dilated(
        a, w_sn, window_strides=(1, 1, 1), padding=[(padding, padding)] * 3,
        dimension_numbers=("NCDHW", "OIDHW", "NCDHW"))
    return y + b[None, :, None, None, None]


# ----------------------------------------------------------------------------
if __name__ == "__main__":
    key = jax.random.PRNGKey(0)
    kx, kp = jax.random.split(key)

    # PreActivationSpectralNorm(in_features=4, out_features=8,
    #   batch_norm_module=SpectralBatchNorm3d, activation_module=ReLU,
    #   layer_module=Conv3d, kernel_size=3, padding=1, bias=True,
    #   input_size=16, coeff=3.0, n_power_iterations=1)
    C_IN, C_OUT, K, PAD, SIZE = 4, 8, 3, 1, 16

    params, ref = build_params(
        kp, c_in=C_IN, c_out=C_OUT, kernel_size=K, padding=PAD,
        input_size=SIZE, bias=True, coeff=3.0, n_power_iterations=1)

    # input in PyTorch NCDHW layout
    x = jax.random.normal(kx, (2, C_IN, SIZE, SIZE, SIZE), jnp.float32)

    fwd = jax.jit(make_forward(c_in=C_IN, c_out=C_OUT, kernel_size=K,
                               padding=PAD, coeff=3.0, use_bn=True))
    y = jax.block_until_ready(fwd(x, params))
    assert y.shape == (2, C_OUT, SIZE, SIZE, SIZE) and y.dtype == jnp.float32

    # sanity-check against plain JAX (bf16 MXU operands -> loose tolerance)
    y_ref = reference_forward(x, ref["w_sn"], ref["b"], params["gamma"],
                              params["beta"], params["running_var"],
                              padding=PAD, coeff=3.0, use_bn=True)
    max_err = float(jnp.max(jnp.abs(y - y_ref)))
    assert max_err < 5e-2, f"max abs error too large: {max_err}"

    print("KERNEL_OK")
</pallas_src>

<mosaic_0001>
module attributes {stable_mosaic.version = 11 : i64} {
  func.func @kernel(%arg0: i32, %arg1: memref<256x64xf32, #tpu.memory_space<vmem>>, %arg2: memref<1x64xf32, #tpu.memory_space<vmem>>, %arg3: memref<1x64xf32, #tpu.memory_space<vmem>>, %arg4: memref<576x128xbf16, #tpu.memory_space<vmem>>, %arg5: memref<1x128xf32, #tpu.memory_space<vmem>>, %arg6: memref<256x128xf32, #tpu.memory_space<vmem>>, %arg7: memref<18x18x64xf32, #tpu.memory_space<vmem>>, %arg8: memref<256x576xbf16, #tpu.memory_space<vmem>>) attributes {dimension_semantics = [#tpu.dimension_semantics<parallel>], iteration_bounds = array<i64: 2>, scalar_prefetch = 0 : i64, scratch_operands = 2 : i64, tpu.core_type = #tpu.core_type<tc>, window_params = [{transform_indices = @transform_0, window_bounds = array<i64: 256, 64>}, {pipeline_mode = #tpu.pipeline_mode<synchronous>, transform_indices = @transform_1, window_bounds = array<i64: 1, 64>}, {pipeline_mode = #tpu.pipeline_mode<synchronous>, transform_indices = @transform_2, window_bounds = array<i64: 1, 64>}, {pipeline_mode = #tpu.pipeline_mode<synchronous>, transform_indices = @transform_3, window_bounds = array<i64: 576, 128>}, {pipeline_mode = #tpu.pipeline_mode<synchronous>, transform_indices = @transform_4, window_bounds = array<i64: 1, 128>}, {transform_indices = @transform_5, window_bounds = array<i64: 256, 128>}]} {
    %c0 = arith.constant 0 : index
    %c0_0 = arith.constant 0 : index
    %0 = vector.load %arg1[%c0, %c0_0] : memref<256x64xf32, #tpu.memory_space<vmem>>, vector<256x64xf32>
    %c0_1 = arith.constant 0 : index
    %c0_2 = arith.constant 0 : index
    %1 = vector.load %arg2[%c0_1, %c0_2] : memref<1x64xf32, #tpu.memory_space<vmem>>, vector<1x64xf32>
    %2 = vector.broadcast %1 : vector<1x64xf32> to vector<256x64xf32>
    %3 = arith.mulf %0, %2 : vector<256x64xf32>
    %c0_3 = arith.constant 0 : index
    %c0_4 = arith.constant 0 : index
    %4 = vector.load %arg3[%c0_3, %c0_4] : memref<1x64xf32, #tpu.memory_space<vmem>>, vector<1x64xf32>
    %5 = vector.broadcast %4 : vector<1x64xf32> to vector<256x64xf32>
    %6 = arith.addf %3, %5 : vector<256x64xf32>
    %cst = arith.constant 0.000000e+00 : f32
    %7 = vector.broadcast %cst : f32 to vector<256x64xf32>
    %8 = arith.maximumf %6, %7 : vector<256x64xf32>
    %cst_5 = arith.constant 0.000000e+00 : f32
    %9 = vector.broadcast %cst_5 : f32 to vector<1x18x64xf32>
    %c0_6 = arith.constant 0 : index
    %c0_7 = arith.constant 0 : index
    %c0_8 = arith.constant 0 : index
    %10 = vector.load %arg7[%c0_6, %c0_7, %c0_8] : memref<18x18x64xf32, #tpu.memory_space<vmem>>, vector<1x18x64xf32>
    tpu.vector_store %arg7[%c0_6, %c0_7, %c0_8], %9 {strides = array<i32>} : memref<18x18x64xf32, #tpu.memory_space<vmem>>, vector<1x18x64xf32>,
    %cst_9 = arith.constant 0.000000e+00 : f32
    %11 = vector.broadcast %cst_9 : f32 to vector<1x18x64xf32>
    %c17 = arith.constant 17 : index
    %c0_10 = arith.constant 0 : index
    %c0_11 = arith.constant 0 : index
    %12 = vector.load %arg7[%c17, %c0_10, %c0_11] : memref<18x18x64xf32, #tpu.memory_space<vmem>>, vector<1x18x64xf32>
    tpu.vector_store %arg7[%c17, %c0_10, %c0_11], %11 {strides = array<i32>} : memref<18x18x64xf32, #tpu.memory_space<vmem>>, vector<1x18x64xf32>,
    %cst_12 = arith.constant 0.000000e+00 : f32
    %13 = vector.broadcast %cst_12 : f32 to vector<16x1x64xf32>
    %c1 = arith.constant 1 : index
    %c0_13 = arith.constant 0 : index
    %c0_14 = arith.constant 0 : index
    %14 = vector.load %arg7[%c1, %c0_13, %c0_14] : memref<18x18x64xf32, #tpu.memory_space<vmem>>, vector<16x1x64xf32>
    tpu.vector_store %arg7[%c1, %c0_13, %c0_14], %13 {strides = array<i32>} : memref<18x18x64xf32, #tpu.memory_space<vmem>>, vector<16x1x64xf32>,
    %cst_15 = arith.constant 0.000000e+00 : f32
    %15 = vector.broadcast %cst_15 : f32 to vector<16x1x64xf32>
    %c1_16 = arith.constant 1 : index
    %c17_17 = arith.constant 17 : index
    %c0_18 = arith.constant 0 : index
    %16 = vector.load %arg7[%c1_16, %c17_17, %c0_18] : memref<18x18x64xf32, #tpu.memory_space<vmem>>, vector<16x1x64xf32>
    tpu.vector_store %arg7[%c1_16, %c17_17, %c0_18], %15 {strides = array<i32>} : memref<18x18x64xf32, #tpu.memory_space<vmem>>, vector<16x1x64xf32>,
    %17 = vector.shape_cast %8 : vector<256x64xf32> to vector<16x16x64xf32>
    %c1_19 = arith.constant 1 : index
    %c1_20 = arith.constant 1 : index
    %c0_21 = arith.constant 0 : index
    %18 = vector.load %arg7[%c1_19, %c1_20, %c0_21] : memref<18x18x64xf32, #tpu.memory_space<vmem>>, vector<16x16x64xf32>
    tpu.vector_store %arg7[%c1_19, %c1_20, %c0_21], %17 {strides = array<i32>} : memref<18x18x64xf32, #tpu.memory_space<vmem>>, vector<16x16x64xf32>,
    %c0_22 = arith.constant 0 : index
    %c0_23 = arith.constant 0 : index
    %c0_24 = arith.constant 0 : index
    %19 = vector.load %arg7[%c0_22, %c0_23, %c0_24] : memref<18x18x64xf32, #tpu.memory_space<vmem>>, vector<16x16x64xf32>
    %20 = vector.shape_cast %19 : vector<16x16x64xf32> to vector<256x64xf32>
    %21 = arith.truncf %20 : vector<256x64xf32> to vector<256x64xbf16>
    %c0_25 = arith.constant 0 : index
    %c0_26 = arith.constant 0 : index
    %22 = vector.load %arg8[%c0_25, %c0_26] : memref<256x576xbf16, #tpu.memory_space<vmem>>, vector<256x64xbf16>
    tpu.vector_store %arg8[%c0_25, %c0_26], %21 {strides = array<i32>} : memref<256x576xbf16, #tpu.memory_space<vmem>>, vector<256x64xbf16>,
    %c0_27 = arith.constant 0 : index
    %c1_28 = arith.constant 1 : index
    %c0_29 = arith.constant 0 : index
    %23 = vector.load %arg7[%c0_27, %c1_28, %c0_29] : memref<18x18x64xf32, #tpu.memory_space<vmem>>, vector<16x16x64xf32>
    %24 = vector.shape_cast %23 : vector<16x16x64xf32> to vector<256x64xf32>
    %25 = arith.truncf %24 : vector<256x64xf32> to vector<256x64xbf16>
    %c0_30 = arith.constant 0 : index
    %c64 = arith.constant 64 : index
    %26 = vector.load %arg8[%c0_30, %c64] : memref<256x576xbf16, #tpu.memory_space<vmem>>, vector<256x64xbf16>
    tpu.vector_store %arg8[%c0_30, %c64], %25 {strides = array<i32>} : memref<256x576xbf16, #tpu.memory_space<vmem>>, vector<256x64xbf16>,
    %c0_31 = arith.constant 0 : index
    %c2 = arith.constant 2 : index
    %c0_32 = arith.constant 0 : index
    %27 = vector.load %arg7[%c0_31, %c2, %c0_32] : memref<18x18x64xf32, #tpu.memory_space<vmem>>, vector<16x16x64xf32>
    %28 = vector.shape_cast %27 : vector<16x16x64xf32> to vector<256x64xf32>
    %29 = arith.truncf %28 : vector<256x64xf32> to vector<256x64xbf16>
    %c0_33 = arith.constant 0 : index
    %c128 = arith.constant 128 : index
    %30 = vector.load %arg8[%c0_33, %c128] : memref<256x576xbf16, #tpu.memory_space<vmem>>, vector<256x64xbf16>
    tpu.vector_store %arg8[%c0_33, %c128], %29 {strides = array<i32>} : memref<256x576xbf16, #tpu.memory_space<vmem>>, vector<256x64xbf16>,
    %c1_34 = arith.constant 1 : index
    %c0_35 = arith.constant 0 : index
    %c0_36 = arith.constant 0 : index
    %31 = vector.load %arg7[%c1_34, %c0_35, %c0_36] : memref<18x18x64xf32, #tpu.memory_space<vmem>>, vector<16x16x64xf32>
    %32 = vector.shape_cast %31 : vector<16x16x64xf32> to vector<256x64xf32>
    %33 = arith.truncf %32 : vector<256x64xf32> to vector<256x64xbf16>
    %c0_37 = arith.constant 0 : index
    %c192 = arith.constant 192 : index
    %34 = vector.load %arg8[%c0_37, %c192] : memref<256x576xbf16, #tpu.memory_space<vmem>>, vector<256x64xbf16>
    tpu.vector_store %arg8[%c0_37, %c192], %33 {strides = array<i32>} : memref<256x576xbf16, #tpu.memory_space<vmem>>, vector<256x64xbf16>,
    %c1_38 = arith.constant 1 : index
    %c1_39 = arith.constant 1 : index
    %c0_40 = arith.constant 0 : index
    %35 = vector.load %arg7[%c1_38, %c1_39, %c0_40] : memref<18x18x64xf32, #tpu.memory_space<vmem>>, vector<16x16x64xf32>
    %36 = vector.shape_cast %35 : vector<16x16x64xf32> to vector<256x64xf32>
    %37 = arith.truncf %36 : vector<256x64xf32> to vector<256x64xbf16>
    %c0_41 = arith.constant 0 : index
    %c256 = arith.constant 256 : index
    %38 = vector.load %arg8[%c0_41, %c256] : memref<256x576xbf16, #tpu.memory_space<vmem>>, vector<256x64xbf16>
    tpu.vector_store %arg8[%c0_41, %c256], %37 {strides = array<i32>} : memref<256x576xbf16, #tpu.memory_space<vmem>>, vector<256x64xbf16>,
    %c1_42 = arith.constant 1 : index
    %c2_43 = arith.constant 2 : index
    %c0_44 = arith.constant 0 : index
    %39 = vector.load %arg7[%c1_42, %c2_43, %c0_44] : memref<18x18x64xf32, #tpu.memory_space<vmem>>, vector<16x16x64xf32>
    %40 = vector.shape_cast %39 : vector<16x16x64xf32> to vector<256x64xf32>
    %41 = arith.truncf %40 : vector<256x64xf32> to vector<256x64xbf16>
    %c0_45 = arith.constant 0 : index
    %c320 = arith.constant 320 : index
    %42 = vector.load %arg8[%c0_45, %c320] : memref<256x576xbf16, #tpu.memory_space<vmem>>, vector<256x64xbf16>
    tpu.vector_store %arg8[%c0_45, %c320], %41 {strides = array<i32>} : memref<256x576xbf16, #tpu.memory_space<vmem>>, vector<256x64xbf16>,
    %c2_46 = arith.constant 2 : index
    %c0_47 = arith.constant 0 : index
    %c0_48 = arith.constant 0 : index
    %43 = vector.load %arg7[%c2_46, %c0_47, %c0_48] : memref<18x18x64xf32, #tpu.memory_space<vmem>>, vector<16x16x64xf32>
    %44 = vector.shape_cast %43 : vector<16x16x64xf32> to vector<256x64xf32>
    %45 = arith.truncf %44 : vector<256x64xf32> to vector<256x64xbf16>
    %c0_49 = arith.constant 0 : index
    %c384 = arith.constant 384 : index
    %46 = vector.load %arg8[%c0_49, %c384] : memref<256x576xbf16, #tpu.memory_space<vmem>>, vector<256x64xbf16>
    tpu.vector_store %arg8[%c0_49, %c384], %45 {strides = array<i32>} : memref<256x576xbf16, #tpu.memory_space<vmem>>, vector<256x64xbf16>,
    %c2_50 = arith.constant 2 : index
    %c1_51 = arith.constant 1 : index
    %c0_52 = arith.constant 0 : index
    %47 = vector.load %arg7[%c2_50, %c1_51, %c0_52] : memref<18x18x64xf32, #tpu.memory_space<vmem>>, vector<16x16x64xf32>
    %48 = vector.shape_cast %47 : vector<16x16x64xf32> to vector<256x64xf32>
    %49 = arith.truncf %48 : vector<256x64xf32> to vector<256x64xbf16>
    %c0_53 = arith.constant 0 : index
    %c448 = arith.constant 448 : index
    %50 = vector.load %arg8[%c0_53, %c448] : memref<256x576xbf16, #tpu.memory_space<vmem>>, vector<256x64xbf16>
    tpu.vector_store %arg8[%c0_53, %c448], %49 {strides = array<i32>} : memref<256x576xbf16, #tpu.memory_space<vmem>>, vector<256x64xbf16>,
    %c2_54 = arith.constant 2 : index
    %c2_55 = arith.constant 2 : index
    %c0_56 = arith.constant 0 : index
    %51 = vector.load %arg7[%c2_54, %c2_55, %c0_56] : memref<18x18x64xf32, #tpu.memory_space<vmem>>, vector<16x16x64xf32>
    %52 = vector.shape_cast %51 : vector<16x16x64xf32> to vector<256x64xf32>
    %53 = arith.truncf %52 : vector<256x64xf32> to vector<256x64xbf16>
    %c0_57 = arith.constant 0 : index
    %c512 = arith.constant 512 : index
    %54 = vector.load %arg8[%c0_57, %c512] : memref<256x576xbf16, #tpu.memory_space<vmem>>, vector<256x64xbf16>
    tpu.vector_store %arg8[%c0_57, %c512], %53 {strides = array<i32>} : memref<256x576xbf16, #tpu.memory_space<vmem>>, vector<256x64xbf16>,
    %c0_58 = arith.constant 0 : index
    %c0_59 = arith.constant 0 : index
    %55 = vector.load %arg8[%c0_58, %c0_59] : memref<256x576xbf16, #tpu.memory_space<vmem>>, vector<256x576xbf16>
    %c0_60 = arith.constant 0 : index
    %c0_61 = arith.constant 0 : index
    %56 = vector.load %arg4[%c0_60, %c0_61] : memref<576x128xbf16, #tpu.memory_space<vmem>>, vector<576x128xbf16>
    %cst_62 = arith.constant dense<0.000000e+00> : vector<256x128xf32>
    %57 = tpu.matmul %55, %56, %cst_62 {dimension_numbers = #tpu.dot_dimension_numbers<[1], [0], [0], [1], [0, 0, 1, 1], [], []>} : vector<256x576xbf16>, vector<576x128xbf16>, vector<256x128xf32> -> vector<256x128xf32>
    %c0_63 = arith.constant 0 : index
    %c0_64 = arith.constant 0 : index
    %58 = vector.load %arg5[%c0_63, %c0_64] : memref<1x128xf32, #tpu.memory_space<vmem>>, vector<1x128xf32>
    %59 = vector.broadcast %58 : vector<1x128xf32> to vector<256x128xf32>
    %60 = arith.addf %57, %59 : vector<256x128xf32>
    %c0_65 = arith.constant 0 : index
    %c0_66 = arith.constant 0 : index
    %61 = vector.load %arg6[%c0_65, %c0_66] : memref<256x128xf32, #tpu.memory_space<vmem>>, vector<256x128xf32>
    tpu.vector_store %arg6[%c0_65, %c0_66], %60 {strides = array<i32>} : memref<256x128xf32, #tpu.memory_space<vmem>>, vector<256x128xf32>,
    return
  }
  func.func @transform_0(%arg0: i32) -> (i32, i32) {
    %c0_i32 = arith.constant 0 : i32
    %c0_i32_0 = arith.constant 0 : i32
    return %arg0, %c0_i32 : i32, i32
  }
  func.func @transform_1(%arg0: i32) -> (i32, i32) {
    %c0_i32 = arith.constant 0 : i32
    %c0_i32_0 = arith.constant 0 : i32
    %c0_i32_1 = arith.constant 0 : i32
    return %c0_i32, %c0_i32_0 : i32, i32
  }
  func.func @transform_2(%arg0: i32) -> (i32, i32) {
    %c0_i32 = arith.constant 0 : i32
    %c0_i32_0 = arith.constant 0 : i32
    %c0_i32_1 = arith.constant 0 : i32
    return %c0_i32, %c0_i32_0 : i32, i32
  }
  func.func @transform_3(%arg0: i32) -> (i32, i32) {
    %c0_i32 = arith.constant 0 : i32
    %c0_i32_0 = arith.constant 0 : i32
    %c0_i32_1 = arith.constant 0 : i32
    return %c0_i32, %c0_i32_0 : i32, i32
  }
  func.func @transform_4(%arg0: i32) -> (i32, i32) {
    %c0_i32 = arith.constant 0 : i32
    %c0_i32_0 = arith.constant 0 : i32
    %c0_i32_1 = arith.constant 0 : i32
    return %c0_i32, %c0_i32_0 : i32, i32
  }
  func.func @transform_5(%arg0: i32) -> (i32, i32) {
    %c0_i32 = arith.constant 0 : i32
    %c0_i32_0 = arith.constant 0 : i32
    return %arg0, %c0_i32 : i32, i32
  }
}

</mosaic_0001>

<bundles_post_ra>
// kernel: tile.18
= control target key start
LH: loop header
LB: loop body
LE: loop exit
PB: predicated region body
PF: predicated region fallthrough
CT: control target
= control target key end

     0   :  { %s28_s0 = inlined_call_operand.vmem [shape: f32[4], index: 0, kind: input, shape index: {}]   ;;  %s29_s1 = inlined_call_operand.vmem [shape: f32[16,4], index: 1, kind: output, shape index: {}]  }
   0x1   :  { %v4_v0 = vld [vmem:[%s28_s0] ss:$0 sm:$0xff] }
   0x2   :  { %5 = vst [vmem:[%s29_s1] sm:$0xff] %v4_v0  ;;  %8 = vst [vmem:[%s29_s1 + $0x8] sm:$0xff] %v4_v0 }

// kernel: tile.19
= control target key start
LH: loop header
LB: loop body
LE: loop exit
PB: predicated region body
PF: predicated region fallthrough
CT: control target
= control target key end

     0   :  { %s131_s10 = smov 60   ;;  %s132_s11 = smov 52   ;;  %vm3_vm0 = vcmask 31744   ;;  %vm9_vm1 = vcmask 523744   ;;  %vm15_vm2 = vcmask 490944   ;;  %vm21_vm3 = vcmask 458144   ;;  %s207_s0 = inlined_call_operand.vmem [shape: f32[16,4], index: 0, kind: input, shape index: {}]   ;;  %s208_s1 = inlined_call_operand.vmem [shape: f32[1,64], index: 1, kind: output, shape index: {}]  }
   0x1   :  { %v101_v0 = vld [vmem:[%s207_s0 + $0xf] sm:$0x1]   ;;  %v103_v1 = vld [vmem:[%s207_s0 + $0xd] sm:$0x1]   ;;  %v102_v2 = vld [vmem:[%s207_s0 + $0xe] sm:$0x1]  }
   0x2   :  { %7 = vrot.lane.b32.xlu0 %v101_v0, %s131_s10  ;;  %19 = vrot.lane.b32.xlu1 %v103_v1, %s132_s11  ;;  %v104_v3 = vld [vmem:[%s207_s0 + $0xc] sm:$0x1]   ;;  %s133_s16 = smov 56   ;;  %s134_s17 = smov 48   ;;  %v105_v4 = vld [vmem:[%s207_s0 + $0xb] sm:$0x1]  }
   0x3   :  { %v106_v5 = vld [vmem:[%s207_s0 + $0xa] sm:$0x1]   ;;  %v2_v6 = vld [vmem:[%s207_s0] sm:$0x1]   ;;  %s135_s24 = smov 44   ;;  %s136_s25 = smov 40  }
   0x4   :  { %4 = vst.msk [vmem:[#allocation0] sm:$0x1] %vm3_vm0, %v2_v6   ;;  %v107_v7 = vld [vmem:[%s207_s0 + $0x9] sm:$0x1]   ;;  %v108_v8 = vld [vmem:[%s207_s0 + $0x8] sm:$0x1]  }
   0x5   :  { %s137_s30 = smov 36   ;;  %s138_s2 = smov 32   ;;  %v109_v9 = vld [vmem:[%s207_s0 + $0x7] sm:$0x1]   ;;  %v110_v10 = vld [vmem:[%s207_s0 + $0x6] sm:$0x1]  }
   0x6   :  { %13 = vrot.lane.b32.xlu0 %v102_v2, %s133_s16  ;;  %25 = vrot.lane.b32.xlu1 %v104_v3, %s134_s17  ;;  %s139_s7 = smov 28   ;;  %s140_s8 = smov 24   ;;  %v111_v11 = vld [vmem:[%s207_s0 + $0x5] sm:$0x1]   ;;  %v112_v12 = vld [vmem:[%s207_s0 + $0x4] sm:$0x1]  }
   0x7   :  { %s141_s13 = smov 20   ;;  %s142_s14 = smov 16   ;;  %v113_v13 = vld [vmem:[%s207_s0 + $0x3] sm:$0x1]   ;;  %v114_v14 = vld [vmem:[%s207_s0 + $0x2] sm:$0x1]  }
   0x8   :  { %s143_s19 = smov 12   ;;  %s144_s20 = smov 8   ;;  %v115_v15 = vld [vmem:[%s207_s0 + $0x1] sm:$0x1]   ;;  %vm27_vm4 = vcmask 425344   ;;  %vm33_vm5 = vcmask 392544  }
   0x9   :  { %s145_s0 = smov 4   ;;  %vm39_vm6 = vcmask 359744   ;;  %vm45_vm7 = vcmask 326944   ;;  %vm51_vm8 = vcmask 294144   ;;  %vm57_vm9 = vcmask 261344  }
   0xa   :  { %31 = vrot.lane.b32.xlu0 %v105_v4, %s135_s24  ;;  %37 = vrot.lane.b32.xlu1 %v106_v5, %s136_s25  ;;  %vm63_vm10 = vcmask 228544   ;;  %vm69_vm11 = vcmask 195744   ;;  %vm75_vm12 = vcmask 162944   ;;  %vm81_vm13 = vcmask 130144  }
   0xb   :  { %vm87_vm14 = vcmask 97344   ;;  %vm93_vm15 = vcmask 64544  }
   0xe   :  { %43 = vrot.lane.b32.xlu0 %v107_v7, %s137_s30  ;;  %49 = vrot.lane.b32.xlu1 %v108_v8, %s138_s2 }
  0x12   :  { %55 = vrot.lane.b32.xlu0 %v109_v9, %s139_s7  ;;  %61 = vrot.lane.b32.xlu1 %v110_v10, %s140_s8 }
  0x16   :  { %67 = vrot.lane.b32.xlu0 %v111_v11, %s141_s13  ;;  %73 = vrot.lane.b32.xlu1 %v112_v12, %s142_s14 }
  0x1a   :  { %79 = vrot.lane.b32.xlu0 %v113_v13, %s143_s19  ;;  %85 = vrot.lane.b32.xlu1 %v114_v14, %s144_s20 }
  0x1e   :  { %91 = vrot.lane.b32.xlu0 %v115_v15, %s145_s0 }
  0x74   :  { %v8_v16 = vpop.permute.xlu0 %7   ;;  %v20_v17 = vpop.permute.xlu1 %19  }
  0x75   :  { %10 = vst.msk [vmem:[#allocation0] sm:$0x1] %vm9_vm1, %v8_v16  }
  0x78   :  { %v14_v18 = vpop.permute.xlu0 %13   ;;  %v26_v19 = vpop.permute.xlu1 %25  }
  0x79   :  { %16 = vst.msk [vmem:[#allocation0] sm:$0x1] %vm15_vm2, %v14_v18  }
  0x7a   :  { %22 = vst.msk [vmem:[#allocation0] sm:$0x1] %vm21_vm3, %v20_v17  }
  0x7b   :  { %28 = vst.msk [vmem:[#allocation0] sm:$0x1] %vm27_vm4, %v26_v19  }
  0x7c   :  { %v32_v20 = vpop.permute.xlu0 %31   ;;  %v38_v21 = vpop.permute.xlu1 %37  }
  0x7d   :  { %34 = vst.msk [vmem:[#allocation0] sm:$0x1] %vm33_vm5, %v32_v20  }
  0x7e   :  { %40 = vst.msk [vmem:[#allocation0] sm:$0x1] %vm39_vm6, %v38_v21  }
  0x80   :  { %v44_v22 = vpop.permute.xlu0 %43   ;;  %v50_v23 = vpop.permute.xlu1 %49  }
  0x81   :  { %46 = vst.msk [vmem:[#allocation0] sm:$0x1] %vm45_vm7, %v44_v22  }
  0x82   :  { %52 = vst.msk [vmem:[#allocation0] sm:$0x1] %vm51_vm8, %v50_v23  }
  0x84   :  { %v56_v24 = vpop.permute.xlu0 %55   ;;  %v62_v25 = vpop.permute.xlu1 %61  }
  0x85   :  { %58 = vst.msk [vmem:[#allocation0] sm:$0x1] %vm57_vm9, %v56_v24  }
  0x86   :  { %64 = vst.msk [vmem:[#allocation0] sm:$0x1] %vm63_vm10, %v62_v25  }
  0x88   :  { %v68_v26 = vpop.permute.xlu0 %67   ;;  %v74_v27 = vpop.permute.xlu1 %73  }
  0x89   :  { %70 = vst.msk [vmem:[#allocation0] sm:$0x1] %vm69_vm11, %v68_v26  }
  0x8a   :  { %76 = vst.msk [vmem:[#allocation0] sm:$0x1] %vm75_vm12, %v74_v27  }
  0x8c   :  { %v80_v28 = vpop.permute.xlu0 %79   ;;  %v86_v29 = vpop.permute.xlu1 %85  }
  0x8d   :  { %82 = vst.msk [vmem:[#allocation0] sm:$0x1] %vm81_vm13, %v80_v28  }
  0x8e   :  { %88 = vst.msk [vmem:[#allocation0] sm:$0x1] %vm87_vm14, %v86_v29  }
  0x90   :  { %v92_v30 = vpop.permute.xlu0 %91  }
  0x91   :  { %94 = vst.msk [vmem:[#allocation0] sm:$0x1] %vm93_vm15, %v92_v30  }
  0x98   :  { %v98_v31 = vld [vmem:[#allocation0] sm:$0x1] }
  0x99   :  { %100 = vst [vmem:[%s208_s1] sm:$0x1] %v98_v31 }

// kernel: forward.1
= control target key start
LH: loop header
LB: loop body
LE: loop exit
PB: predicated region body
PF: predicated region fallthrough
CT: control target
= control target key end

     0   :  { %s2726_s18 = smov 0   ;;  %s3550_s0 = inlined_call_operand.vmem [shape: f32[512,64], index: 0, kind: input, shape index: {}]   ;;  %s3551_s1 = inlined_call_operand.vmem [shape: f32[1,64], index: 1, kind: input, shape index: {}]   ;;  %s3552_s2 = inlined_call_operand.vmem [shape: f32[1,64], index: 2, kind: input, shape index: {}]   ;;  %s3553_s3 = inlined_call_operand.vmem [shape: bf16[576,128], index: 3, kind: input, shape index: {}]   ;;  %s3554_s4 = inlined_call_operand.vmem [shape: f32[1,128], index: 4, kind: input, shape index: {}]   ;;  %s3555_s5 = inlined_call_operand.vmem [shape: f32[512,128], index: 5, kind: output, shape index: {}]  }
   0x1 LB: > { %s2274_s19 = sadd.s32 4294967295, %s2692_s18   ;;  %p2278_p0 = scmp.ge.s32.totalorder %s2692_s18, 1  ;;  %s2692_s18 = sphi %s2726_s18, %s15_s18  }
   0x2   : > { %p188_p1 = scmp.lt.s32.totalorder %s2692_s18, 3 }
   0x4   : > { %p189_p2 = pnand %p2278_p0, %p188_p1 }
   0x5   : > { %s2734_s20 = sshll.u32 (!%p189_p2), %s2274_s19, 5  ;;  %vm371_vm0 = vcmask (!%p189_p2), 523264   ;;  %vm381_vm1 = vcmask (!%p189_p2), 516096   ;;  %vm374_vm2 = vcmask (!%p189_p2), 517120   ;;  %v2650_v0 = vld [vmem:[%s3553_s3 + $0x40] sm:$0xff] (!%p189_p2)   ;;  %v2694_v1 = vmov (!%p189_p2), 0.0  }
   0x6   : > { %192 = sbr.rel (%p189_p2) target bundleno = 536 (0x218), region = 40  ;;  %p217_p3 = scmp.lt.s32.totalorder (!%p189_p2), %s2734_s20, 63  ;;  %394 = vst.msk [vmem:[#allocation2 + $0x138] sm:$0x1] (!%p189_p2), %vm381_vm1, %v2694_v1  ;;  %382 = vst.msk [vmem:[#allocation2 + $0x18] sm:$0x1] (!%p189_p2), %vm381_vm1, %v2694_v1  ;;  %2624 = vmatprep.subr.bf16.mxu1 (!%p189_p2), %v2650_v0  ;;  %2340 = vmatprep.subr.bf16.mxu0 (!%p189_p2), %v2650_v0 }
   0x7   : > { %372 = vst.msk [vmem:[#allocation2] sm:$0xff] (!%p189_p2), %vm371_vm0, %v2694_v1  ;;  %373 = vst.msk [vmem:[#allocation2 + $0x8] sm:$0xff] (!%p189_p2), %vm371_vm0, %v2694_v1  ;;  %v2786_v2 = vld [vmem:[%s3551_s1] ss:$0 sm:$0xff] (!%p189_p2)  ;;  %v2652_v4 = vld [vmem:[%s3553_s3 + $0x48] sm:$0xff] (!%p189_p2)   ;;  %s2695_s19 = smov (!%p189_p2), 64  }
   0x8   : > { %377 = vst.msk [vmem:[#allocation2 + $0x198] sm:$0xff] (!%p189_p2), %vm371_vm0, %v2694_v1  ;;  %378 = vst.msk [vmem:[#allocation2 + $0x1a0] sm:$0xff] (!%p189_p2), %vm371_vm0, %v2694_v1  ;;  %v2651_v3 = vld [vmem:[%s3553_s3] sm:$0xff] (!%p189_p2)   ;;  %v2653_v6 = vld [vmem:[%s3553_s3 + $0x8] sm:$0xff] (!%p189_p2)   ;;  %vm622_vm3 = vcmask (!%p189_p2), 1048064  }
   0x9   : > { %383 = vst.msk [vmem:[#allocation2 + $0x30] sm:$0x1] (!%p189_p2), %vm381_vm1, %v2694_v1  ;;  %384 = vst.msk [vmem:[#allocation2 + $0x48] sm:$0x1] (!%p189_p2), %vm381_vm1, %v2694_v1  ;;  %v2798_v5 = vld [vmem:[%s3552_s2] ss:$0 sm:$0xff] (!%p189_p2)  ;;  %2632 = vmatpush3.bf16.msra.mxu1 (!%p189_p2), %v2651_v3  ;;  %2341 = vmatpush3.bf16.msra.mxu0 (!%p189_p2), %v2651_v3 }
   0xa   : > { %385 = vst.msk [vmem:[#allocation2 + $0x60] sm:$0x1] (!%p189_p2), %vm381_vm1, %v2694_v1  ;;  %386 = vst.msk [vmem:[#allocation2 + $0x78] sm:$0x1] (!%p189_p2), %vm381_vm1, %v2694_v1  ;;  %2625 = vmatprep.subr.bf16.mxu1 (!%p189_p2), %v2652_v4  ;;  %2342 = vmatprep.subr.bf16.mxu0 (!%p189_p2), %v2652_v4  ;;  %v2654_v7 = vld [vmem:[%s3553_s3 + $0x50] sm:$0xff] (!%p189_p2)  }
   0xb   : > { %387 = vst.msk [vmem:[#allocation2 + $0x90] sm:$0x1] (!%p189_p2), %vm381_vm1, %v2694_v1  ;;  %388 = vst.msk [vmem:[#allocation2 + $0xa8] sm:$0x1] (!%p189_p2), %vm381_vm1, %v2694_v1 }
   0xc   : > { %389 = vst.msk [vmem:[#allocation2 + $0xc0] sm:$0x1] (!%p189_p2), %vm381_vm1, %v2694_v1  ;;  %390 = vst.msk [vmem:[#allocation2 + $0xd8] sm:$0x1] (!%p189_p2), %vm381_vm1, %v2694_v1 }
   0xd   : > { %391 = vst.msk [vmem:[#allocation2 + $0xf0] sm:$0x1] %vm381_vm1, %v2694_v1  ;;  %392 = vst.msk [vmem:[#allocation2 + $0x108] sm:$0x1] %vm381_vm1, %v2694_v1  ;;  %s3557_s20 = smov (!%p217_p3, %s2734_s20), 63  ;;  %2633 = vmatpush3.bf16.msra.mxu1 %v2653_v6  ;;  %2343 = vmatpush3.bf16.msra.mxu0 %v2653_v6 }
   0xe   : > { %393 = vst.msk [vmem:[#allocation2 + $0x120] sm:$0x1] %vm381_vm1, %v2694_v1  ;;  %395 = vst.msk [vmem:[#allocation2 + $0x150] sm:$0x1] %vm381_vm1, %v2694_v1  ;;  %s2280_s29 = sshll.u32 %s3557_s20, 3  ;;  %2626 = vmatprep.subr.bf16.mxu1 %v2654_v7  ;;  %2344 = vmatprep.subr.bf16.mxu0 %v2654_v7 }
   0xf   : > { %396 = vst.msk [vmem:[#allocation2 + $0x168] sm:$0x1] %vm381_vm1, %v2694_v1  ;;  %397 = vst.msk [vmem:[#allocation2 + $0x180] sm:$0x1] %vm381_vm1, %v2694_v1  ;;  %s2808_s11 = scalar_lea.vmem %s3550_s0, %s2280_s29  ;;  %s3458_s15 = scalar_lea.vmem %s3555_s5, %s2280_s29 }
  0x10   : > { %398 = vst.msk [vmem:[#allocation2 + $0x29] sm:$0x1] %vm381_vm1, %v2694_v1  ;;  %399 = vst.msk [vmem:[#allocation2 + $0x41] sm:$0x1] %vm381_vm1, %v2694_v1  ;;  %v253_v8 = vld [vmem:[%s2808_s11 + $0xc0] sm:$0xff]  ;;  %v254_v9 = vld [vmem:[%s2808_s11 + $0xc8] sm:$0xff] }
  0x11   : > { %400 = vst.msk [vmem:[#allocation2 + $0x59] sm:$0x1] %vm381_vm1, %v2694_v1  ;;  %401 = vst.msk [vmem:[#allocation2 + $0x71] sm:$0x1] %vm381_vm1, %v2694_v1  ;;  %v229_v10 = vld [vmem:[%s2808_s11] sm:$0xff]  ;;  %v292_v11 = vmul.f32 %v2786_v2, %v253_v8  ;;  %v293_v12 = vmul.f32 %v2786_v2, %v254_v9  ;;  %v230_v13 = vld [vmem:[%s2808_s11 + $0x8] sm:$0xff] }
  0x12   : > { %402 = vst.msk [vmem:[#allocation2 + $0x89] sm:$0x1] %vm381_vm1, %v2694_v1  ;;  %403 = vst.msk [vmem:[#allocation2 + $0xa1] sm:$0x1] %vm381_vm1, %v2694_v1  ;;  %v268_v14 = vmul.f32 %v2786_v2, %v229_v10  ;;  %v251_v15 = vld [vmem:[%s2808_s11 + $0xb0] sm:$0xff]  ;;  %v252_v16 = vld [vmem:[%s2808_s11 + $0xb8] sm:$0xff]  ;;  %v269_v17 = vmul.f32 %v2786_v2, %v230_v13 }
  0x13   : > { %404 = vst.msk [vmem:[#allocation2 + $0xb9] sm:$0x1] %vm381_vm1, %v2694_v1  ;;  %405 = vst.msk [vmem:[#allocation2 + $0xd1] sm:$0x1] %vm381_vm1, %v2694_v1  ;;  %v290_v18 = vmul.f32 %v2786_v2, %v251_v15  ;;  %v291_v19 = vmul.f32 %v2786_v2, %v252_v16  ;;  %v255_v20 = vld [vmem:[%s2808_s11 + $0xd0] sm:$0xff]  ;;  %v331_v21 = vadd.f32 %v2798_v5, %v292_v11  ;;  %v256_v24 = vld [vmem:[%s2808_s11 + $0xd8] sm:$0xff] }
  0x14   : > { %406 = vst.msk [vmem:[#allocation2 + $0xe9] sm:$0x1] %vm381_vm1, %v2694_v1  ;;  %407 = vst.msk [vmem:[#allocation2 + $0x101] sm:$0x1] %vm381_vm1, %v2694_v1  ;;  %v332_v22 = vadd.f32 %v2798_v5, %v293_v12  ;;  %v307_v23 = vadd.f32 %v2798_v5, %v268_v14  ;;  %v308_v25 = vadd.f32 %v2798_v5, %v269_v17  ;;  %v231_v29 = vld [vmem:[%s2808_s11 + $0x10] sm:$0xff]  ;;  %v232_v30 = vld [vmem:[%s2808_s11 + $0x18] sm:$0xff] }
  0x15   : > { %408 = vst.msk [vmem:[#allocation2 + $0x119] sm:$0x1] %vm381_vm1, %v2694_v1  ;;  %409 = vst.msk [vmem:[#allocation2 + $0x131] sm:$0x1] %vm381_vm1, %v2694_v1  ;;  %v329_v26 = vadd.f32 %v2798_v5, %v290_v18  ;;  %v330_v27 = vadd.f32 %v2798_v5, %v291_v19  ;;  %v294_v28 = vmul.f32 %v2786_v2, %v255_v20  ;;  %v257_v31 = vld [vmem:[%s2808_s11 + $0xe0] sm:$0xff]  ;;  %v363_v32 = vmax.f32 %v331_v21, 0.0 }
  0x16   : > { %410 = vst.msk [vmem:[#allocation2 + $0x149] sm:$0x1] %vm381_vm1, %v2694_v1  ;;  %411 = vst.msk [vmem:[#allocation2 + $0x161] sm:$0x1] %vm381_vm1, %v2694_v1  ;;  %v364_v33 = vmax.f32 %v332_v22, 0.0  ;;  %v339_v34 = vmax.f32 %v307_v23, 0.0  ;;  %v295_v35 = vmul.f32 %v2786_v2, %v256_v24  ;;  %v270_v44 = vmul.f32 %v2786_v2, %v231_v29 }
  0x17   : > { %412 = vst.msk [vmem:[#allocation2 + $0x179] sm:$0x1] %vm381_vm1, %v2694_v1  ;;  %413 = vst.msk [vmem:[#allocation2 + $0x191] sm:$0x1] %vm381_vm1, %v2694_v1  ;;  %v258_v36 = vld [vmem:[%s2808_s11 + $0xe8] sm:$0xff]  ;;  %v233_v37 = vld [vmem:[%s2808_s11 + $0x20] sm:$0xff]  ;;  %v333_v42 = vadd.f32 %v2798_v5, %v294_v28  ;;  %v271_v45 = vmul.f32 %v2786_v2, %v232_v30  ;;  %v296_v46 = vmul.f32 %v2786_v2, %v257_v31 }
  0x18   : > { %375 = vst.msk [vmem:[#allocation2 + $0x10] sm:$0x3] %vm374_vm2, %v2694_v1  ;;  %379 = vst.msk [vmem:[#allocation2 + $0x1a8] sm:$0x3] %vm374_vm2, %v2694_v1  ;;  %v234_v38 = vld [vmem:[%s2808_s11 + $0x28] sm:$0xff]  ;;  %v340_v39 = vmax.f32 %v308_v25, 0.0  ;;  %v334_v43 = vadd.f32 %v2798_v5, %v295_v35  ;;  %v297_v49 = vmul.f32 %v2786_v2, %v258_v36  ;;  %v272_v50 = vmul.f32 %v2786_v2, %v233_v37 }
  0x19   : > { %v361_v40 = vmax.f32 %v329_v26, 0.0  ;;  %v362_v41 = vmax.f32 %v330_v27, 0.0  ;;  %438 = vst.msk [vmem:[#allocation2 + $0x139] sm:$0xff] %vm371_vm0, %v363_v32  ;;  %439 = vst.msk [vmem:[#allocation2 + $0x141] sm:$0xff] %vm371_vm0, %v364_v33  ;;  %v259_v47 = vld [vmem:[%s2808_s11 + $0xf0] sm:$0xff]  ;;  %v365_v48 = vmax.f32 %v333_v42, 0.0  ;;  %v273_v51 = vmul.f32 %v2786_v2, %v234_v38 }
  0x1a   : > { %414 = vst.msk [vmem:[#allocation2 + $0x19] sm:$0xff] %vm371_vm0, %v339_v34  ;;  %415 = vst.msk [vmem:[#allocation2 + $0x21] sm:$0xff] %vm371_vm0, %v340_v39  ;;  %v260_v52 = vld [vmem:[%s2808_s11 + $0xf8] sm:$0xff]  ;;  %v366_v53 = vmax.f32 %v334_v43, 0.0  ;;  %v309_v54 = vadd.f32 %v2798_v5, %v270_v44  ;;  %v310_v55 = vadd.f32 %v2798_v5, %v271_v45  ;;  %v335_v56 = vadd.f32 %v2798_v5, %v296_v46  ;;  %v235_v57 = vld [vmem:[%s2808_s11 + $0x30] sm:$0xff] }
  0x1b   : > { %436 = vst.msk [vmem:[#allocation2 + $0x121] sm:$0xff] %vm371_vm0, %v361_v40  ;;  %437 = vst.msk [vmem:[#allocation2 + $0x129] sm:$0xff] %vm371_vm0, %v362_v41  ;;  %v236_v58 = vld [vmem:[%s2808_s11 + $0x38] sm:$0xff]  ;;  %v336_v59 = vadd.f32 %v2798_v5, %v297_v49  ;;  %v311_v60 = vadd.f32 %v2798_v5, %v272_v50  ;;  %v312_v61 = vadd.f32 %v2798_v5, %v273_v51  ;;  %v237_v63 = vld [vmem:[%s2808_s11 + $0x40] sm:$0xff] }
  0x1c   : > { %440 = vst.msk [vmem:[#allocation2 + $0x151] sm:$0xff] %vm371_vm0, %v365_v48  ;;  %v298_v62 = vmul.f32 %v2786_v2, %v259_v47  ;;  %v238_v0 = vld [vmem:[%s2808_s11 + $0x48] sm:$0xff]  ;;  %v239_v1 = vld [vmem:[%s2808_s11 + $0x50] sm:$0xff]  ;;  %441 = vst.msk [vmem:[#allocation2 + $0x159] sm:$0xff] %vm371_vm0, %v366_v53  ;;  %v341_v3 = vmax.f32 %v309_v54, 0.0  ;;  %v342_v4 = vmax.f32 %v310_v55, 0.0  ;;  %v299_v7 = vmul.f32 %v2786_v2, %v260_v52 }
  0x1d   : > { %v367_v6 = vmax.f32 %v335_v56, 0.0  ;;  %v240_v8 = vld [vmem:[%s2808_s11 + $0x58] sm:$0xff]  ;;  %v368_v9 = vmax.f32 %v336_v59, 0.0  ;;  %v343_v10 = vmax.f32 %v311_v60, 0.0  ;;  %v344_v11 = vmax.f32 %v312_v61, 0.0  ;;  %v2655_v13 = vld [vmem:[%s3553_s3 + $0x10] sm:$0xff]  }
  0x1e   : > { %v337_v12 = vadd.f32 %v2798_v5, %v298_v62  ;;  %v2877_v14 = vld [vmem:[#allocation2 + $0x1] sm:$0xff]  ;;  %416 = vst.msk [vmem:[#allocation2 + $0x31] sm:$0xff] %vm371_vm0, %v341_v3  ;;  %417 = vst.msk [vmem:[#allocation2 + $0x39] sm:$0xff] %vm371_vm0, %v342_v4  ;;  %v338_v16 = vadd.f32 %v2798_v5, %v299_v7  ;;  %v274_v17 = vmul.f32 %v2786_v2, %v235_v57  ;;  %v2656_v20 = vld [vmem:[%s3553_s3 + $0x58] sm:$0xff]   ;;  %2634 = vmatpush3.bf16.msra.mxu1 %v2655_v13 }
  0x1f   : > { %v2879_v15 = vld [vmem:[#allocation2 + $0x9] sm:$0xff]  ;;  %442 = vst.msk [vmem:[#allocation2 + $0x169] sm:$0xff] %vm371_vm0, %v367_v6  ;;  %v275_v18 = vmul.f32 %v2786_v2, %v236_v58  ;;  %v276_v19 = vmul.f32 %v2786_v2, %v237_v63  ;;  %443 = vst.msk [vmem:[#allocation2 + $0x171] sm:$0xff] %vm371_vm0, %v368_v9  ;;  %v277_v25 = vmul.f32 %v2786_v2, %v238_v0  ;;  %2345 = vmatpush3.bf16.msra.mxu0 %v2655_v13  ;;  %v241_v38 = vld [vmem:[%s2808_s11 + $0x60] sm:$0xff] }
  0x20   : > { %v727_v21 = vld [vmem:[#allocation2 + $0x138] sm:$0xff]  ;;  %v728_v22 = vld [vmem:[#allocation2 + $0x140] sm:$0xff]  ;;  %418 = vst.msk [vmem:[#allocation2 + $0x49] sm:$0xff] %vm371_vm0, %v343_v10  ;;  %419 = vst.msk [vmem:[#allocation2 + $0x51] sm:$0xff] %vm371_vm0, %v344_v11  ;;  %v369_v24 = vmax.f32 %v337_v12, 0.0  ;;  %v278_v26 = vmul.f32 %v2786_v2, %v239_v1  ;;  %v279_v27 = vmul.f32 %v2786_v2, %v240_v8  ;;  %v370_v32 = vmax.f32 %v338_v16, 0.0  ;;  %2627 = vmatprep.subr.bf16.mxu1 %v2656_v20 }
  0x21   : > { %v703_v23 = vld [vmem:[#allocation2 + $0x18] sm:$0xff]  ;;  %v747_v28 = vpack.c.bf16 %v728_v22, %v727_v21  ;;  %v704_v29 = vld [vmem:[#allocation2 + $0x20] sm:$0xff]  ;;  %v313_v33 = vadd.f32 %v2798_v5, %v274_v17  ;;  %v314_v34 = vadd.f32 %v2798_v5, %v275_v18  ;;  %2346 = vmatprep.subr.bf16.mxu0 %v2656_v20  ;;  %v315_v36 = vadd.f32 %v2798_v5, %v276_v19  ;;  %v242_v39 = vld [vmem:[%s2808_s11 + $0x68] sm:$0xff] }
  0x22   : > { %v534_v30 = vld [vmem:[#allocation2 + $0x121] sm:$0xff]  ;;  %v535_v31 = vld [vmem:[#allocation2 + $0x129] sm:$0xff]  ;;  %v735_v35 = vpack.c.bf16 %v704_v29, %v703_v23  ;;  %444 = vst.msk [vmem:[#allocation2 + $0x181] sm:$0xff] %vm371_vm0, %v369_v24  ;;  %v316_v37 = vadd.f32 %v2798_v5, %v277_v25  ;;  %445 = vst.msk [vmem:[#allocation2 + $0x189] sm:$0xff] %vm371_vm0, %v370_v32  ;;  %v317_v44 = vadd.f32 %v2798_v5, %v278_v26 }
  0x23   : > { %791 = vrot.lane.b32.xlu0 %v747_v28, %s2695_s19  ;;  %v2905_v40 = vpack.c.bf16 %v535_v31, %v534_v30  ;;  %v729_v41 = vld [vmem:[#allocation2 + $0x150] sm:$0xff]  ;;  %v345_v42 = vmax.f32 %v313_v33, 0.0  ;;  %v346_v43 = vmax.f32 %v314_v34, 0.0  ;;  %v244_v46 = vld [vmem:[%s2808_s11 + $0x78] sm:$0xff]  ;;  %v542_v47 = vpack.c.bf16 %v2879_v15, %v2877_v14  ;;  %v245_v53 = vld [vmem:[%s2808_s11 + $0x80] sm:$0xff] }
  0x24   : > { %v243_v45 = vld [vmem:[%s2808_s11 + $0x70] sm:$0xff]  ;;  %767 = vrot.lane.b32.xlu1 %v735_v35, %s2695_s19  ;;  %v730_v48 = vld [vmem:[#allocation2 + $0x158] sm:$0xff]  ;;  %v347_v50 = vmax.f32 %v315_v36, 0.0  ;;  %v348_v51 = vmax.f32 %v316_v37, 0.0  ;;  %v318_v52 = vadd.f32 %v2798_v5, %v279_v27  ;;  %495 = vst.msk [vmem:[#allocation3 + $0x28] sm:$0xff] %vm371_vm0, %v735_v35  ;;  %v537_v56 = vld [vmem:[#allocation2 + $0x141] sm:$0xff]  ;;  %v280_v59 = vmul.f32 %v2786_v2, %v241_v38 }
  0x25   : > { %v895_v49 = vld [vmem:[#allocation2 + $0x1a] sm:$0xff]  ;;  %v748_v54 = vpack.c.bf16 %v730_v48, %v729_v41  ;;  %420 = vst.msk [vmem:[#allocation2 + $0x61] sm:$0xff] %vm371_vm0, %v345_v42  ;;  %421 = vst.msk [vmem:[#allocation2 + $0x69] sm:$0xff] %vm371_vm0, %v346_v43  ;;  %v896_v57 = vld [vmem:[#allocation2 + $0x22] sm:$0xff]  ;;  %v349_v58 = vmax.f32 %v317_v44, 0.0  ;;  %v281_v0 = vmul.f32 %v2786_v2, %v242_v39  ;;  %v282_v1 = vmul.f32 %v2786_v2, %v243_v45 }
  0x26   : > { %v536_v55 = vld [vmem:[#allocation2 + $0x139] sm:$0xff]  ;;  %v705_v60 = vld [vmem:[#allocation2 + $0x30] sm:$0xff]  ;;  %v2920_v62 = vpack.c.bf16 %v896_v57, %v895_v49  ;;  %422 = vst.msk [vmem:[#allocation2 + $0x79] sm:$0xff] %vm371_vm0, %v347_v50  ;;  %423 = vst.msk [vmem:[#allocation2 + $0x81] sm:$0xff] %vm371_vm0, %v348_v51  ;;  %v350_v63 = vmax.f32 %v318_v52, 0.0  ;;  %v319_v6 = vadd.f32 %v2798_v5, %v280_v59  ;;  %v283_v7 = vmul.f32 %v2786_v2, %v244_v46 }
  0x27   : > { %v706_v61 = vld [vmem:[#allocation2 + $0x38] sm:$0xff]  ;;  %v246_v3 = vld [vmem:[%s2808_s11 + $0x88] sm:$0xff]  ;;  %598 = vrot.lane.b32.xlu0 %v2905_v40, %s2695_s19  ;;  %424 = vst.msk [vmem:[#allocation2 + $0x91] sm:$0xff] %vm371_vm0, %v349_v58  ;;  %v284_v8 = vmul.f32 %v2786_v2, %v245_v53  ;;  %508 = vst.msk [vmem:[#allocation3 + $0x230] sm:$0xff] %vm371_vm0, %v748_v54  ;;  %v2935_v9 = vpack.c.bf16 %v537_v56, %v536_v55  ;;  %v320_v12 = vadd.f32 %v2798_v5, %v281_v0 }
  0x28   : > { %v736_v4 = vpack.c.bf16 %v706_v61, %v705_v60  ;;  %574 = vrot.lane.b32.xlu1 %v542_v47, %s2695_s19  ;;  %v512_v10 = vld [vmem:[#allocation2 + $0x19] sm:$0xff]  ;;  %v513_v11 = vld [vmem:[#allocation2 + $0x21] sm:$0xff]  ;;  %425 = vst.msk [vmem:[#allocation2 + $0x99] sm:$0xff] %vm371_vm0, %v350_v63  ;;  %v321_v13 = vadd.f32 %v2798_v5, %v282_v1  ;;  %688 = vst.msk [vmem:[#allocation3 + $0x30] sm:$0xff] %vm371_vm0, %v2920_v62  ;;  %v351_v14 = vmax.f32 %v319_v6, 0.0 }
  0x29   : > { %v322_v15 = vadd.f32 %v2798_v5, %v283_v7  ;;  %v285_v16 = vmul.f32 %v2786_v2, %v246_v3  ;;  %v247_v17 = vld [vmem:[%s2808_s11 + $0x90] sm:$0xff]  ;;  %v248_v18 = vld [vmem:[%s2808_s11 + $0x98] sm:$0xff]  ;;  %v249_v19 = vld [vmem:[%s2808_s11 + $0xa0] sm:$0xff]  ;;  %v352_v21 = vmax.f32 %v320_v12, 0.0  ;;  %v323_v23 = vadd.f32 %v2798_v5, %v284_v8 }
  0x2a   : > { %496 = vst.msk [vmem:[#allocation3 + $0x50] sm:$0xff] %vm371_vm0, %v736_v4  ;;  %v897_v20 = vld [vmem:[#allocation2 + $0x32] sm:$0xff]  ;;  %v353_v22 = vmax.f32 %v321_v13, 0.0  ;;  %v250_v24 = vld [vmem:[%s2808_s11 + $0xa8] sm:$0xff]  ;;  %v725_v25 = vld [vmem:[#allocation2 + $0x120] sm:$0xff]  ;;  %v543_v26 = vpack.c.bf16 %v513_v11, %v512_v10  ;;  %v286_v37 = vmul.f32 %v2786_v2, %v247_v17  ;;  %v287_v43 = vmul.f32 %v2786_v2, %v248_v18 }
  0x2b   : > { %793 = vrot.lane.b32.xlu0 %v748_v54, %s2695_s19  ;;  %v898_v27 = vld [vmem:[#allocation2 + $0x3a] sm:$0xff]  ;;  %v899_v28 = vld [vmem:[#allocation2 + $0x4a] sm:$0xff]  ;;  %v900_v29 = vld [vmem:[#allocation2 + $0x52] sm:$0xff]  ;;  %426 = vst.msk [vmem:[#allocation2 + $0xa9] sm:$0xff] %vm371_vm0, %v351_v14  ;;  %v354_v30 = vmax.f32 %v322_v15, 0.0  ;;  %v324_v31 = vadd.f32 %v2798_v5, %v285_v16  ;;  %v355_v36 = vmax.f32 %v323_v23, 0.0  ;;  %v288_v44 = vmul.f32 %v2786_v2, %v249_v19 }
  0x2c   : > { %600 = vrot.lane.b32.xlu1 %v2935_v9, %s2695_s19  ;;  %v731_v32 = vld [vmem:[#allocation2 + $0x168] sm:$0xff]  ;;  %v732_v33 = vld [vmem:[#allocation2 + $0x170] sm:$0xff]  ;;  %v2955_v34 = vpack.c.bf16 %v898_v27, %v897_v20  ;;  %v2957_v35 = vpack.c.bf16 %v900_v29, %v899_v28  ;;  %427 = vst.msk [vmem:[#allocation2 + $0xb1] sm:$0xff] %vm371_vm0, %v352_v21  ;;  %428 = vst.msk [vmem:[#allocation2 + $0xc1] sm:$0xff] %vm371_vm0, %v353_v22  ;;  %v325_v46 = vadd.f32 %v2798_v5, %v286_v37 }
  0x2d   : > { %v726_v38 = vld [vmem:[#allocation2 + $0x128] sm:$0xff]  ;;  %v538_v39 = vld [vmem:[#allocation2 + $0x151] sm:$0xff]  ;;  %v539_v41 = vld [vmem:[#allocation2 + $0x159] sm:$0xff]  ;;  %429 = vst.msk [vmem:[#allocation2 + $0xc9] sm:$0xff] %vm371_vm0, %v354_v30  ;;  %v356_v42 = vmax.f32 %v324_v31, 0.0  ;;  %v289_v47 = vmul.f32 %v2786_v2, %v250_v24  ;;  %v749_v48 = vpack.c.bf16 %v732_v33, %v731_v32  ;;  %v326_v52 = vadd.f32 %v2798_v5, %v287_v43 }
  0x2e   : > { %v707_v45 = vld [vmem:[#allocation2 + $0x48] sm:$0xff]  ;;  %430 = vst.msk [vmem:[#allocation2 + $0xd9] sm:$0xff] %vm371_vm0, %v355_v36  ;;  %689 = vst.msk [vmem:[#allocation3 + $0x58] sm:$0xff] %vm371_vm0, %v2955_v34  ;;  %v708_v49 = vld [vmem:[#allocation2 + $0x50] sm:$0xff]  ;;  %v327_v53 = vadd.f32 %v2798_v5, %v288_v44  ;;  %v2976_v54 = vpack.c.bf16 %v726_v38, %v725_v25  ;;  %v2979_v2 = vpack.c.bf16 %v539_v41, %v538_v39  ;;  %v357_v58 = vmax.f32 %v325_v46, 0.0 }
  0x2f   : > { %690 = vst.msk [vmem:[#allocation3 + $0x80] sm:$0xff] %vm371_vm0, %v2957_v35  ;;  %769 = vrot.lane.b32.xlu0 %v736_v4, %s2695_s19  ;;  %v514_v50 = vld [vmem:[#allocation2 + $0x31] sm:$0xff]  ;;  %v515_v51 = vld [vmem:[#allocation2 + $0x39] sm:$0xff]  ;;  %431 = vst.msk [vmem:[#allocation2 + $0xe1] sm:$0xff] %vm371_vm0, %v356_v42  ;;  %v328_v59 = vadd.f32 %v2798_v5, %v289_v47  ;;  %v358_v1 = vmax.f32 %v326_v52, 0.0  ;;  %v737_v5 = vpack.c.bf16 %v708_v49, %v707_v45 }
  0x30   : > { %576 = vrot.lane.b32.xlu1 %v543_v26, %s2695_s19  ;;  %v901_v55 = vld [vmem:[#allocation2 + $0x62] sm:$0xff]  ;;  %v902_v56 = vld [vmem:[#allocation2 + $0x6a] sm:$0xff]  ;;  %v903_v57 = vld [vmem:[#allocation2 + $0x7a] sm:$0xff]  ;;  %v359_v3 = vmax.f32 %v327_v53, 0.0  ;;  %506 = vst.msk [vmem:[#allocation3 + $0x1e0] sm:$0xff] %vm371_vm0, %v2976_v54  ;;  %v2998_v8 = vpack.c.bf16 %v515_v51, %v514_v50 }
  0x31   : > { %v2982_v60 = vpack.c.bf16 %v902_v56, %v901_v55  ;;  %v904_v61 = vld [vmem:[#allocation2 + $0x82] sm:$0xff]  ;;  %v905_v63 = vld [vmem:[#allocation2 + $0x92] sm:$0xff]  ;;  %v906_v0 = vld [vmem:[#allocation2 + $0x9a] sm:$0xff]  ;;  %432 = vst.msk [vmem:[#allocation2 + $0xf1] sm:$0xff] %vm371_vm0, %v357_v58  ;;  %v360_v7 = vmax.f32 %v328_v59, 0.0 }
  0x32   : > { %v2986_v4 = vpack.c.bf16 %v904_v61, %v903_v57  ;;  %v2988_v6 = vpack.c.bf16 %v906_v0, %v905_v63  ;;  %433 = vst.msk [vmem:[#allocation2 + $0xf9] sm:$0xff] %vm371_vm0, %v358_v1  ;;  %434 = vst.msk [vmem:[#allocation2 + $0x109] sm:$0xff] %vm371_vm0, %v359_v3  ;;  %v733_v10 = vld [vmem:[#allocation2 + $0x180] sm:$0xff]  ;;  %v734_v11 = vld [vmem:[#allocation2 + $0x188] sm:$0xff] }
  0x33   : > { %795 = vrot.lane.b32.xlu0 %v749_v48, %s2695_s19  ;;  %691 = vst.msk [vmem:[#allocation3 + $0xa8] sm:$0xff] %vm371_vm0, %v2982_v60  ;;  %435 = vst.msk [vmem:[#allocation2 + $0x111] sm:$0xff] %vm371_vm0, %v360_v7  ;;  %v540_v12 = vld [vmem:[#allocation2 + $0x169] sm:$0xff]  ;;  %v541_v13 = vld [vmem:[#allocation2 + $0x171] sm:$0xff]  ;;  %v750_v18 = vpack.c.bf16 %v734_v11, %v733_v10 }
  0x34   : > { %602 = vrot.lane.b32.xlu1 %v2979_v2, %s2695_s19  ;;  %692 = vst.msk [vmem:[#allocation3 + $0xd0] sm:$0xff] %vm371_vm0, %v2986_v4  ;;  %693 = vst.msk [vmem:[#allocation3 + $0xf8] sm:$0xff] %vm371_vm0, %v2988_v6  ;;  %v907_v14 = vld [vmem:[#allocation2 + $0xaa] sm:$0xff]  ;;  %v709_v15 = vld [vmem:[#allocation2 + $0x60] sm:$0xff]  ;;  %v3010_v23 = vpack.c.bf16 %v541_v13, %v540_v12 }
  0x35   : > { %v710_v16 = vld [vmem:[#allocation2 + $0x68] sm:$0xff]  ;;  %v908_v17 = vld [vmem:[#allocation2 + $0xb2] sm:$0xff]  ;;  %v2658_v36 = vld [vmem:[%s3553_s3 + $0x60] sm:$0xff]  }
  0x36   : > { %v3006_v19 = vpack.c.bf16 %v908_v17, %v907_v14  ;;  %v909_v20 = vld [vmem:[#allocation2 + $0xc2] sm:$0xff]  ;;  %v910_v21 = vld [vmem:[#allocation2 + $0xca] sm:$0xff]  ;;  %v911_v22 = vld [vmem:[#allocation2 + $0xda] sm:$0xff]  ;;  %v738_v30 = vpack.c.bf16 %v710_v16, %v709_v15 }
  0x37   : > { %771 = vrot.lane.b32.xlu0 %v737_v5, %s2695_s19  ;;  %v3012_v24 = vpack.c.bf16 %v910_v21, %v909_v20  ;;  %v912_v25 = vld [vmem:[#allocation2 + $0xe2] sm:$0xff]  ;;  %v2657_v26 = vld [vmem:[%s3553_s3 + $0x18] sm:$0xff]   ;;  %v664_v46 = vld [vmem:[#allocation2 + $0x12a] sm:$0xff] }
  0x38   : > { %578 = vrot.lane.b32.xlu1 %v2998_v8, %s2695_s19  ;;  %v516_v27 = vld [vmem:[#allocation2 + $0x49] sm:$0xff]  ;;  %v517_v28 = vld [vmem:[#allocation2 + $0x51] sm:$0xff]  ;;  %v3017_v29 = vpack.c.bf16 %v912_v25, %v911_v22  ;;  %694 = vst.msk [vmem:[#allocation3 + $0x120] sm:$0xff] %vm371_vm0, %v3006_v19  ;;  %2635 = vmatpush3.bf16.msra.mxu1 %v2657_v26  ;;  %v2659_v38 = vld [vmem:[%s3553_s3 + $0x20] sm:$0xff]  }
  0x39   : > { %2347 = vmatpush3.bf16.msra.mxu0 %v2657_v26  ;;  %695 = vst.msk [vmem:[#allocation3 + $0x148] sm:$0xff] %vm371_vm0, %v3012_v24  ;;  %v3028_v31 = vpack.c.bf16 %v517_v28, %v516_v27  ;;  %v913_v32 = vld [vmem:[#allocation2 + $0xf2] sm:$0xff]  ;;  %v914_v33 = vld [vmem:[#allocation2 + $0xfa] sm:$0xff]  ;;  %2628 = vmatprep.subr.bf16.mxu1 %v2658_v36  ;;  %v2660_v42 = vld [vmem:[%s3553_s3 + $0x68] sm:$0xff]  }
  0x3a   : > { %696 = vst.msk [vmem:[#allocation3 + $0x170] sm:$0xff] %vm371_vm0, %v3017_v29  ;;  %v3033_v37 = vpack.c.bf16 %v914_v33, %v913_v32  ;;  %v711_v39 = vld [vmem:[#allocation2 + $0x78] sm:$0xff]  ;;  %v712_v41 = vld [vmem:[#allocation2 + $0x80] sm:$0xff]  ;;  %2348 = vmatprep.subr.bf16.mxu0 %v2658_v36  ;;  %v519_v44 = vld [vmem:[#allocation2 + $0x69] sm:$0xff] }
  0x3b   : > { %797 = vrot.lane.b32.xlu0 %v750_v18, %s2695_s19  ;;  %v518_v43 = vld [vmem:[#allocation2 + $0x61] sm:$0xff]  ;;  %v640_v50 = vld [vmem:[#allocation2 + $0xa] sm:$0xff]  ;;  %v916_v52 = vld [vmem:[#allocation2 + $0x112] sm:$0xff]  ;;  %v739_v57 = vpack.c.bf16 %v712_v41, %v711_v39 }
  0x3c   : > { %604 = vrot.lane.b32.xlu1 %v3010_v23, %s2695_s19  ;;  %2636 = vmatpush3.bf16.msra.mxu1 %v2659_v38  ;;  %v663_v45 = vld [vmem:[#allocation2 + $0x122] sm:$0xff]  ;;  %697 = vst.msk [vmem:[#allocation3 + $0x198] sm:$0xff] %vm371_vm0, %v3033_v37  ;;  %v915_v51 = vld [vmem:[#allocation2 + $0x10a] sm:$0xff]  ;;  %v546_v59 = vpack.c.bf16 %v519_v44, %v518_v43  ;;  %v2664_v1 = vld [vmem:[%s3553_s3 + $0x78] sm:$0xff]  }
  0x3d   : > { %2349 = vmatpush3.bf16.msra.mxu0 %v2659_v38  ;;  %v3046_v47 = vpack.c.bf16 %v664_v46, %v663_v45  ;;  %v2661_v48 = vld [vmem:[%s3553_s3 + $0x28] sm:$0xff]   ;;  %2629 = vmatprep.subr.bf16.mxu1 %v2660_v42  ;;  %v3053_v55 = vpack.c.bf16 %v916_v52, %v915_v51  ;;  %v2662_v56 = vld [vmem:[%s3553_s3 + $0x70] sm:$0xff]   ;;  %v446_v61 = vld [vmem:[#allocation2] sm:$0xff] }
  0x3e   : > { %v639_v49 = vld [vmem:[#allocation2 + $0x2] sm:$0xff]  ;;  %2350 = vmatprep.subr.bf16.mxu0 %v2660_v42  ;;  %v2663_v58 = vld [vmem:[%s3553_s3 + $0x30] sm:$0xff]   ;;  %v665_v3 = vld [vmem:[#allocation2 + $0x13a] sm:$0xff] }
  0x3f   : > { %773 = vrot.lane.b32.xlu0 %v738_v30, %s2695_s19  ;;  %699 = vst.msk [vmem:[#allocation3 + $0x1e8] sm:$0xff] %vm371_vm0, %v3046_v47  ;;  %v671_v53 = vpack.c.bf16 %v640_v50, %v639_v49  ;;  %v447_v63 = vld [vmem:[#allocation2 + $0x8] sm:$0xff]  ;;  %698 = vst.msk [vmem:[#allocation3 + $0x1c0] sm:$0xff] %vm371_vm0, %v3053_v55  ;;  %v713_v7 = vld [vmem:[#allocation2 + $0x90] sm:$0xff] }
  0x40   : > { %580 = vrot.lane.b32.xlu1 %v3028_v31, %s2695_s19  ;;  %2637 = vmatpush3.bf16.msra.mxu1 %v2661_v48  ;;  %v478_v0 = vpack.c.bf16 %v447_v63, %v446_v61  ;;  %v666_v5 = vld [vmem:[#allocation2 + $0x142] sm:$0xff]  ;;  %v2665_v11 = vld [vmem:[%s3553_s3 + $0x38] sm:$0xff]   ;;  %v669_v30 = vld [vmem:[#allocation2 + $0x16a] sm:$0xff] }
  0x41   : > { %687 = vst.msk [vmem:[#allocation3 + $0x8] sm:$0xff] %vm371_vm0, %v671_v53  ;;  %2351 = vmatpush3.bf16.msra.mxu0 %v2661_v48  ;;  %2630 = vmatprep.subr.bf16.mxu1 %v2662_v56  ;;  %v3073_v10 = vpack.c.bf16 %v666_v5, %v665_v3  ;;  %v472_v12 = vld [vmem:[#allocation2 + $0x138] sm:$0xff]  ;;  %v473_v13 = vld [vmem:[#allocation2 + $0x140] sm:$0xff]  ;;  %v715_v26 = vld [vmem:[#allocation2 + $0xa8] sm:$0xff] }
  0x42   : > { %2352 = vmatprep.subr.bf16.mxu0 %v2662_v56  ;;  %494 = vst.msk [vmem:[#allocation3] sm:$0xff] %vm371_vm0, %v478_v0  ;;  %v714_v14 = vld [vmem:[#allocation2 + $0x98] sm:$0xff]  ;;  %v491_v15 = vpack.c.bf16 %v473_v13, %v472_v12  ;;  %v2666_v16 = vld [vmem:[%s3553_s3 + $0xc0] sm:$0xff]   ;;  %v476_v33 = vld [vmem:[#allocation2 + $0x168] sm:$0xff] }
  0x43   : > { %1152 = vrot.lane.b32.xlu0 %v2998_v8, %s2695_s19  ;;  %v521_v8 = vld [vmem:[#allocation2 + $0x81] sm:$0xff]  ;;  %700 = vst.msk [vmem:[#allocation3 + $0x210] sm:$0xff] %vm371_vm0, %v3073_v10  ;;  %v740_v17 = vpack.c.bf16 %v714_v14, %v713_v7  ;;  %v667_v21 = vld [vmem:[#allocation2 + $0x152] sm:$0xff]  ;;  %v524_v48 = vld [vmem:[#allocation2 + $0xa9] sm:$0xff] }
  0x44   : > { %959 = vrot.lane.b32.xlu1 %v2920_v62, %s2695_s19  ;;  %v520_v62 = vld [vmem:[#allocation2 + $0x79] sm:$0xff]  ;;  %2638 = vmatpush3.bf16.msra.mxu1 %v2663_v58  ;;  %507 = vst.msk [vmem:[#allocation3 + $0x208] sm:$0xff] %vm371_vm0, %v491_v15  ;;  %v522_v27 = vld [vmem:[#allocation2 + $0x91] sm:$0xff]  ;;  %v452_v42 = vld [vmem:[#allocation2 + $0x48] sm:$0xff] }
  0x45   : > { %2353 = vmatpush3.bf16.msra.mxu0 %v2663_v58  ;;  %2631 = vmatprep.subr.bf16.mxu1 %v2664_v1  ;;  %v3090_v18 = vld [vmem:[%s3553_s3 + $0x100] sm:$0xff]   ;;  %v547_v20 = vpack.c.bf16 %v521_v8, %v520_v62  ;;  %v477_v36 = vld [vmem:[#allocation2 + $0x170] sm:$0xff]  ;;  %v1025_v50 = vld [vmem:[#allocation2 + $0x38] sm:$0xff] }
  0x46   : > { %2354 = vmatprep.subr.bf16.mxu0 %v2664_v1  ;;  %v668_v22 = vld [vmem:[#allocation2 + $0x15a] sm:$0xff]  ;;  %v493_v39 = vpack.c.bf16 %v477_v36, %v476_v33  ;;  %v453_v43 = vld [vmem:[#allocation2 + $0x50] sm:$0xff]  ;;  %v455_v1 = vld [vmem:[#allocation2 + $0x68] sm:$0xff] }
  0x47   : > { %775 = vrot.lane.b32.xlu0 %v739_v57, %s2695_s19  ;;  %v3095_v25 = vpack.c.bf16 %v668_v22, %v667_v21  ;;  %v523_v28 = vld [vmem:[#allocation2 + $0x99] sm:$0xff]  ;;  %v481_v45 = vpack.c.bf16 %v453_v43, %v452_v42  ;;  %v1024_v46 = vld [vmem:[#allocation2 + $0x30] sm:$0xff]  ;;  %v1116_v52 = vld [vmem:[#allocation2 + $0x181] sm:$0xff] }
  0x48   : > { %582 = vrot.lane.b32.xlu1 %v546_v59, %s2695_s19  ;;  %2639 = vmatpush3.bf16.msra.mxu1 %v2665_v11  ;;  %v548_v41 = vpack.c.bf16 %v523_v28, %v522_v27  ;;  %509 = vst.msk [vmem:[#allocation3 + $0x258] sm:$0xff] %vm371_vm0, %v493_v39  ;;  %1085 = vst.msk [vmem:[#allocation3 + $0x220] sm:$0xff] %vm371_vm0, %v493_v39  ;;  %v717_v44 = vld [vmem:[#allocation2 + $0xc0] sm:$0xff]  ;;  %v525_v49 = vld [vmem:[#allocation2 + $0xb1] sm:$0xff]  ;;  %v1056_v51 = vpack.c.bf16 %v1025_v50, %v1024_v46 }
  0x49   : > { %2355 = vmatpush3.bf16.msra.mxu0 %v2665_v11  ;;  %2452 = vmatprep.subr.bf16.mxu1 %v2666_v16  ;;  %701 = vst.msk [vmem:[#allocation3 + $0x238] sm:$0xff] %vm371_vm0, %v3095_v25  ;;  %497 = vst.msk [vmem:[#allocation3 + $0x78] sm:$0xff] %vm371_vm0, %v481_v45  ;;  %v1117_v53 = vld [vmem:[#allocation2 + $0x189] sm:$0xff]  ;;  %v831_v57 = vld [vmem:[#allocation2 + $0x19] sm:$0xff]  ;;  %v3122_v0 = vpack.c.bf16 %v525_v49, %v524_v48 }
  0x4a   : > { %2584 = vmatprep.subr.bf16.mxu0 %v3090_v18  ;;  %1073 = vst.msk [vmem:[#allocation3 + $0x40] sm:$0xff] %vm371_vm0, %v481_v45  ;;  %v3114_v56 = vpack.c.bf16 %v1117_v53, %v1116_v52  ;;  %v832_v58 = vld [vmem:[#allocation2 + $0x21] sm:$0xff]  ;;  %1072 = vst.msk [vmem:[#allocation3 + $0x18] sm:$0xff] %vm371_vm0, %v1056_v51  ;;  %v719_v7 = vld [vmem:[#allocation2 + $0xd8] sm:$0xff] }
  0x4b   : > { %1154 = vrot.lane.b32.xlu0 %v3028_v31, %s2695_s19  ;;  %v670_v31 = vld [vmem:[#allocation2 + $0x172] sm:$0xff]  ;;  %v454_v63 = vld [vmem:[#allocation2 + $0x60] sm:$0xff]  ;;  %v527_v8 = vld [vmem:[#allocation2 + $0xc9] sm:$0xff] }
  0x4c   : > { %961 = vrot.lane.b32.xlu1 %v2955_v34, %s2695_s19  ;;  %v716_v34 = vld [vmem:[#allocation2 + $0xb0] sm:$0xff]  ;;  %v3101_v32 = vpack.c.bf16 %v670_v31, %v669_v30  ;;  %894 = vst.msk [vmem:[#allocation3 + $0x268] sm:$0xff] %vm371_vm0, %v3114_v56  ;;  %v482_v3 = vpack.c.bf16 %v455_v1, %v454_v63  ;;  %v720_v5 = vld [vmem:[#allocation2 + $0xe0] sm:$0xff]  ;;  %v456_v15 = vld [vmem:[#allocation2 + $0x78] sm:$0xff] }
  0x4d   : > { %v741_v38 = vpack.c.bf16 %v716_v34, %v715_v26  ;;  %v526_v62 = vld [vmem:[#allocation2 + $0xc1] sm:$0xff]  ;;  %v834_v11 = vld [vmem:[#allocation2 + $0x39] sm:$0xff]  ;;  %v926_v14 = vld [vmem:[#allocation2 + $0x18a] sm:$0xff]  ;;  %v743_v27 = vpack.c.bf16 %v720_v5, %v719_v7 }
  0x4e   : > { %702 = vst.msk [vmem:[#allocation3 + $0x260] sm:$0xff] %vm371_vm0, %v3101_v32  ;;  %498 = vst.msk [vmem:[#allocation3 + $0xa0] sm:$0xff] %vm371_vm0, %v482_v3  ;;  %v925_v12 = vld [vmem:[#allocation2 + $0x182] sm:$0xff]  ;;  %v836_v22 = vld [vmem:[#allocation2 + $0x51] sm:$0xff]  ;;  %v3136_v33 = vpack.c.bf16 %v527_v8, %v526_v62 }
  0x4f   : > { %777 = vrot.lane.b32.xlu0 %v740_v17, %s2695_s19  ;;  %1074 = vst.msk [vmem:[#allocation3 + $0x68] sm:$0xff] %vm371_vm0, %v482_v3  ;;  %v457_v16 = vld [vmem:[#allocation2 + $0x80] sm:$0xff]  ;;  %v3130_v17 = vpack.c.bf16 %v926_v14, %v925_v12  ;;  %v835_v21 = vld [vmem:[#allocation2 + $0x49] sm:$0xff]  ;;  %v459_v34 = vld [vmem:[#allocation2 + $0x98] sm:$0xff] }
  0x50   : > { %584 = vrot.lane.b32.xlu1 %v547_v20, %s2695_s19  ;;  %v458_v26 = vld [vmem:[#allocation2 + $0x90] sm:$0xff]  ;;  %v865_v28 = vpack.c.bf16 %v836_v22, %v835_v21  ;;  %v837_v30 = vld [vmem:[#allocation2 + $0x61] sm:$0xff]  ;;  %v839_v43 = vld [vmem:[#allocation2 + $0x79] sm:$0xff] }
  0x51   : > { %v838_v31 = vld [vmem:[#allocation2 + $0x69] sm:$0xff]  ;;  %v484_v36 = vpack.c.bf16 %v459_v34, %v458_v26  ;;  %1278 = vst.msk [vmem:[#allocation3 + $0x250] sm:$0xff] %vm371_vm0, %v3130_v17  ;;  %v722_v45 = vld [vmem:[#allocation2 + $0xf8] sm:$0xff]  ;;  %v462_v46 = vld [vmem:[#allocation2 + $0xc0] sm:$0xff] }
  0x52   : > { %v460_v39 = vld [vmem:[#allocation2 + $0xa8] sm:$0xff]  ;;  %881 = vst.msk [vmem:[#allocation3 + $0x60] sm:$0xff] %vm371_vm0, %v865_v28  ;;  %v528_v49 = vld [vmem:[#allocation2 + $0xd9] sm:$0xff]  ;;  %v841_v52 = vld [vmem:[#allocation2 + $0x91] sm:$0xff] }
  0x53   : > { %1156 = vrot.lane.b32.xlu0 %v546_v59, %s2695_s19  ;;  %v863_v59 = vpack.c.bf16 %v832_v58, %v831_v57  ;;  %500 = vst.msk [vmem:[#allocation3 + $0xf0] sm:$0xff] %vm371_vm0, %v484_v36  ;;  %1076 = vst.msk [vmem:[#allocation3 + $0xb8] sm:$0xff] %vm371_vm0, %v484_v36  ;;  %v463_v48 = vld [vmem:[#allocation2 + $0xc8] sm:$0xff]  ;;  %v842_v53 = vld [vmem:[#allocation2 + $0x99] sm:$0xff] }
  0x54   : > { %963 = vrot.lane.b32.xlu1 %v2957_v35, %s2695_s19  ;;  %v718_v35 = vld [vmem:[#allocation2 + $0xc8] sm:$0xff]  ;;  %v486_v51 = vpack.c.bf16 %v463_v48, %v462_v46  ;;  %v464_v57 = vld [vmem:[#allocation2 + $0xd8] sm:$0xff]  ;;  %v868_v58 = vpack.c.bf16 %v842_v53, %v841_v52  ;;  %v466_v7 = vld [vmem:[#allocation2 + $0xf0] sm:$0xff] }
  0x55   : > { %v742_v61 = vpack.c.bf16 %v718_v35, %v717_v44  ;;  %879 = vst.msk [vmem:[#allocation3 + $0x10] sm:$0xff] %vm371_vm0, %v863_v59  ;;  %v721_v44 = vld [vmem:[#allocation2 + $0xf0] sm:$0xff]  ;;  %v529_v50 = vld [vmem:[#allocation2 + $0xe1] sm:$0xff]  ;;  %v467_v5 = vld [vmem:[#allocation2 + $0xf8] sm:$0xff] }
  0x56   : > { %v465_v59 = vld [vmem:[#allocation2 + $0xe0] sm:$0xff]  ;;  %v844_v63 = vld [vmem:[#allocation2 + $0xb1] sm:$0xff]  ;;  %502 = vst.msk [vmem:[#allocation3 + $0x140] sm:$0xff] %vm371_vm0, %v486_v51  ;;  %1078 = vst.msk [vmem:[#allocation3 + $0x108] sm:$0xff] %vm371_vm0, %v486_v51  ;;  %v488_v62 = vpack.c.bf16 %v467_v5, %v466_v7  ;;  %v744_v8 = vpack.c.bf16 %v722_v45, %v721_v44 }
  0x57   : > { %779 = vrot.lane.b32.xlu0 %v741_v38, %s2695_s19  ;;  %v866_v38 = vpack.c.bf16 %v838_v31, %v837_v30  ;;  %v487_v1 = vpack.c.bf16 %v465_v59, %v464_v57  ;;  %884 = vst.msk [vmem:[#allocation3 + $0xd8] sm:$0xff] %vm371_vm0, %v868_v58  ;;  %v846_v12 = vld [vmem:[#allocation2 + $0xc9] sm:$0xff]  ;;  %v530_v21 = vld [vmem:[#allocation2 + $0xf1] sm:$0xff]  ;;  %v531_v22 = vld [vmem:[#allocation2 + $0xf9] sm:$0xff] }
  0x58   : > { %586 = vrot.lane.b32.xlu1 %v548_v41, %s2695_s19  ;;  %504 = vst.msk [vmem:[#allocation3 + $0x190] sm:$0xff] %vm371_vm0, %v488_v62  ;;  %1080 = vst.msk [vmem:[#allocation3 + $0x158] sm:$0xff] %vm371_vm0, %v488_v62  ;;  %v469_v14 = vld [vmem:[#allocation2 + $0x110] sm:$0xff]  ;;  %v552_v26 = vpack.c.bf16 %v531_v22, %v530_v21  ;;  %v848_v28 = vld [vmem:[#allocation2 + $0xe1] sm:$0xff] }
  0x59   : > { %882 = vst.msk [vmem:[#allocation3 + $0x88] sm:$0xff] %vm371_vm0, %v866_v38  ;;  %503 = vst.msk [vmem:[#allocation3 + $0x168] sm:$0xff] %vm371_vm0, %v487_v1  ;;  %v1216_v30 = vld [vmem:[#allocation2 + $0x32] sm:$0xff]  ;;  %v1217_v31 = vld [vmem:[#allocation2 + $0x3a] sm:$0xff] }
  0x5a   : > { %1079 = vst.msk [vmem:[#allocation3 + $0x130] sm:$0xff] %vm371_vm0, %v487_v1  ;;  %v1248_v36 = vpack.c.bf16 %v1217_v31, %v1216_v30  ;;  %v1218_v38 = vld [vmem:[#allocation2 + $0x4a] sm:$0xff]  ;;  %v850_v44 = vld [vmem:[#allocation2 + $0xf9] sm:$0xff]  ;;  %v853_v5 = vld [vmem:[#allocation2 + $0x121] sm:$0xff] }
  0x5b   : > { %1158 = vrot.lane.b32.xlu0 %v547_v20, %s2695_s19  ;;  %v483_v20 = vpack.c.bf16 %v457_v16, %v456_v15  ;;  %v723_v15 = vld [vmem:[#allocation2 + $0x108] sm:$0xff]  ;;  %v724_v16 = vld [vmem:[#allocation2 + $0x110] sm:$0xff]  ;;  %v1225_v59 = vld [vmem:[#allocation2 + $0x9a] sm:$0xff] }
  0x5c   : > { %965 = vrot.lane.b32.xlu1 %v2982_v60, %s2695_s19  ;;  %v833_v60 = vld [vmem:[#allocation2 + $0x31] sm:$0xff]  ;;  %1264 = vst.msk [vmem:[#allocation3 + $0x20] sm:$0xff] %vm371_vm0, %v1248_v36  ;;  %v1045_v51 = vld [vmem:[#allocation2 + $0x128] sm:$0xff]  ;;  %v1047_v7 = vld [vmem:[#allocation2 + $0x140] sm:$0xff] }
  0x5d   : > { %v864_v13 = vpack.c.bf16 %v834_v11, %v833_v60  ;;  %499 = vst.msk [vmem:[#allocation3 + $0xc8] sm:$0xff] %vm371_vm0, %v483_v20  ;;  %1075 = vst.msk [vmem:[#allocation3 + $0x90] sm:$0xff] %vm371_vm0, %v483_v20  ;;  %v551_v60 = vpack.c.bf16 %v529_v50, %v528_v49  ;;  %v845_v11 = vld [vmem:[#allocation2 + $0xc1] sm:$0xff]  ;;  %v1221_v46 = vld [vmem:[#allocation2 + $0x6a] sm:$0xff] }
  0x5e   : > { %v1222_v49 = vld [vmem:[#allocation2 + $0x7a] sm:$0xff]  ;;  %v1223_v50 = vld [vmem:[#allocation2 + $0x82] sm:$0xff]  ;;  %v852_v53 = vld [vmem:[#allocation2 + $0x111] sm:$0xff] }
  0x5f   : > { %781 = vrot.lane.b32.xlu0 %v742_v61, %s2695_s19  ;;  %880 = vst.msk [vmem:[#allocation3 + $0x38] sm:$0xff] %vm371_vm0, %v864_v13  ;;  %v843_v61 = vld [vmem:[#allocation2 + $0xa9] sm:$0xff]  ;;  %v1224_v58 = vld [vmem:[#allocation2 + $0x92] sm:$0xff] }
  0x60   : > { %588 = vrot.lane.b32.xlu1 %v3122_v0, %s2695_s19  ;;  %v869_v3 = vpack.c.bf16 %v844_v63, %v843_v61  ;;  %v468_v13 = vld [vmem:[#allocation2 + $0x108] sm:$0xff]  ;;  %v1252_v61 = vpack.c.bf16 %v1225_v59, %v1224_v58  ;;  %v1227_v1 = vld [vmem:[#allocation2 + $0xb2] sm:$0xff] }
  0x61   : > { %v489_v20 = vpack.c.bf16 %v469_v14, %v468_v13  ;;  %v851_v52 = vld [vmem:[#allocation2 + $0x109] sm:$0xff]  ;;  %v1049_v14 = vld [vmem:[#allocation2 + $0x158] sm:$0xff] }
  0x62   : > { %885 = vst.msk [vmem:[#allocation3 + $0x100] sm:$0xff] %vm371_vm0, %v869_v3  ;;  %v873_v57 = vpack.c.bf16 %v852_v53, %v851_v52  ;;  %v1226_v63 = vld [vmem:[#allocation2 + $0xaa] sm:$0xff]  ;;  %1268 = vst.msk [vmem:[#allocation3 + $0xc0] sm:$0xff] %vm371_vm0, %v1252_v61  ;;  %v1232_v22 = vld [vmem:[#allocation2 + $0xf2] sm:$0xff] }
  0x63   : > { %1160 = vrot.lane.b32.xlu0 %v548_v41, %s2695_s19  ;;  %v461_v41 = vld [vmem:[#allocation2 + $0xb0] sm:$0xff]  ;;  %505 = vst.msk [vmem:[#allocation3 + $0x1b8] sm:$0xff] %vm371_vm0, %v489_v20  ;;  %1081 = vst.msk [vmem:[#allocation3 + $0x180] sm:$0xff] %vm371_vm0, %v489_v20  ;;  %v1253_v3 = vpack.c.bf16 %v1227_v1, %v1226_v63  ;;  %v1053_v52 = vld [vmem:[#allocation2 + $0x188] sm:$0xff] }
  0x64   : > { %967 = vrot.lane.b32.xlu1 %v2986_v4, %s2695_s19  ;;  %v485_v42 = vpack.c.bf16 %v461_v41, %v460_v39  ;;  %v840_v4 = vld [vmem:[#allocation2 + $0x81] sm:$0xff]  ;;  %v1219_v39 = vld [vmem:[#allocation2 + $0x52] sm:$0xff]  ;;  %v532_v41 = vld [vmem:[#allocation2 + $0x109] sm:$0xff]  ;;  %889 = vst.msk [vmem:[#allocation3 + $0x1a0] sm:$0xff] %vm371_vm0, %v873_v57 }
  0x65   : > { %v867_v35 = vpack.c.bf16 %v840_v4, %v839_v43  ;;  %v849_v43 = vld [vmem:[#allocation2 + $0xf1] sm:$0xff]  ;;  %v1220_v4 = vld [vmem:[#allocation2 + $0x62] sm:$0xff]  ;;  %1269 = vst.msk [vmem:[#allocation3 + $0xe8] sm:$0xff] %vm371_vm0, %v1253_v3 }
  0x66   : > { %501 = vst.msk [vmem:[#allocation3 + $0x118] sm:$0xff] %vm371_vm0, %v485_v42  ;;  %1077 = vst.msk [vmem:[#allocation3 + $0xe0] sm:$0xff] %vm371_vm0, %v485_v42  ;;  %v533_v42 = vld [vmem:[#allocation2 + $0x111] sm:$0xff]  ;;  %v872_v45 = vpack.c.bf16 %v850_v44, %v849_v43  ;;  %v1250_v48 = vpack.c.bf16 %v1221_v46, %v1220_v4  ;;  %v2668_v43 = vld [vmem:[%s3553_s3 + $0xc8] sm:$0xff]  }
  0x67   : > { %783 = vrot.lane.b32.xlu0 %v743_v27, %s2695_s19  ;;  %883 = vst.msk [vmem:[#allocation3 + $0xb0] sm:$0xff] %vm371_vm0, %v867_v35  ;;  %v847_v27 = vld [vmem:[#allocation2 + $0xd9] sm:$0xff]  ;;  %v1251_v35 = vpack.c.bf16 %v1223_v50, %v1222_v49  ;;  %v857_v36 = vld [vmem:[#allocation2 + $0x151] sm:$0xff]  ;;  %v1239_v4 = vld [vmem:[#allocation2 + $0x142] sm:$0xff] }
  0x68   : > { %590 = vrot.lane.b32.xlu1 %v3136_v33, %s2695_s19  ;;  %v871_v34 = vpack.c.bf16 %v848_v28, %v847_v27  ;;  %888 = vst.msk [vmem:[#allocation3 + $0x178] sm:$0xff] %vm371_vm0, %v872_v45  ;;  %1266 = vst.msk [vmem:[#allocation3 + $0x70] sm:$0xff] %vm371_vm0, %v1250_v48  ;;  %v1234_v27 = vld [vmem:[#allocation2 + $0x10a] sm:$0xff]  ;;  %v1235_v28 = vld [vmem:[#allocation2 + $0x112] sm:$0xff] }
  0x69   : > { %1267 = vst.msk [vmem:[#allocation3 + $0x98] sm:$0xff] %vm371_vm0, %v1251_v35  ;;  %v1257_v30 = vpack.c.bf16 %v1235_v28, %v1234_v27  ;;  %v1238_v45 = vld [vmem:[#allocation2 + $0x13a] sm:$0xff]  ;;  %v2682_v49 = vld [vmem:[%s3553_s3 + $0x108] sm:$0xff]   ;;  %v2671_v53 = vld [vmem:[%s3553_s3 + $0xd0] sm:$0xff]  }
  0x6a   : > { %887 = vst.msk [vmem:[#allocation3 + $0x150] sm:$0xff] %vm371_vm0, %v871_v34  ;;  %v1259_v50 = vpack.c.bf16 %v1239_v4, %v1238_v45  ;;  %v860_v58 = vld [vmem:[#allocation2 + $0x171] sm:$0xff]  ;;  %v1247_v27 = vld [vmem:[#allocation2 + $0x1a2] sm:$0xff] }
  0x6b   : > { %1162 = vrot.lane.b32.xlu0 %v3122_v0, %s2695_s19  ;;  %v870_v0 = vpack.c.bf16 %v846_v12, %v845_v11  ;;  %v1230_v12 = vld [vmem:[#allocation2 + $0xda] sm:$0xff]  ;;  %1273 = vst.msk [vmem:[#allocation3 + $0x188] sm:$0xff] %vm371_vm0, %v1257_v30  ;;  %v2684_v63 = vld [vmem:[%s3553_s3 + $0x110] sm:$0xff]  }
  0x6c   : > { %969 = vrot.lane.b32.xlu1 %v2988_v6, %s2695_s19  ;;  %v745_v6 = vpack.c.bf16 %v724_v16, %v723_v15  ;;  %1275 = vst.msk [vmem:[#allocation3 + $0x1d8] sm:$0xff] %vm371_vm0, %v1259_v50  ;;  %v2683_v45 = vld [vmem:[%s3553_s3 + $0xb8] sm:$0xff]  }
  0x6d   : > { %886 = vst.msk [vmem:[#allocation3 + $0x128] sm:$0xff] %vm371_vm0, %v870_v0  ;;  %v1231_v0 = vld [vmem:[#allocation2 + $0xe2] sm:$0xff] }
  0x6e   : > { %v1255_v13 = vpack.c.bf16 %v1231_v0, %v1230_v12  ;;  %v2685_v12 = vld [vmem:[%s3553_s3 + $0x118] sm:$0xff]  }
  0x6f   : > { %785 = vrot.lane.b32.xlu0 %v744_v8, %s2695_s19  ;;  %v854_v8 = vld [vmem:[#allocation2 + $0x129] sm:$0xff] }
  0x70   : > { %592 = vrot.lane.b32.xlu1 %v551_v60, %s2695_s19  ;;  %1271 = vst.msk [vmem:[#allocation3 + $0x138] sm:$0xff] %vm371_vm0, %v1255_v13 }
  0x73   : > { %1164 = vrot.lane.b32.xlu0 %v3136_v33, %s2695_s19  ;;  %v1249_v33 = vpack.c.bf16 %v1219_v39, %v1218_v38  ;;  %v858_v38 = vld [vmem:[#allocation2 + $0x159] sm:$0xff] }
  0x74   : > { %971 = vrot.lane.b32.xlu1 %v3006_v19, %s2695_s19  ;;  %v553_v19 = vpack.c.bf16 %v533_v42, %v532_v41 }
  0x75   : > { %1265 = vst.msk [vmem:[#allocation3 + $0x48] sm:$0xff] %vm371_vm0, %v1249_v33 }
  0x77   : > { %787 = vrot.lane.b32.xlu0 %v745_v6, %s2695_s19  ;;  %v1233_v6 = vld [vmem:[#allocation2 + $0xfa] sm:$0xff] }
  0x78   : > { %594 = vrot.lane.b32.xlu1 %v552_v26, %s2695_s19 }
  0x7b   : > { %1166 = vrot.lane.b32.xlu0 %v551_v60, %s2695_s19  ;;  %v1228_v60 = vld [vmem:[#allocation2 + $0xc2] sm:$0xff] }
  0x7c   : > { %973 = vrot.lane.b32.xlu1 %v3012_v24, %s2695_s19  ;;  %v1044_v24 = vld [vmem:[#allocation2 + $0x120] sm:$0xff] }
  0x7f   : > { %789 = vrot.lane.b32.xlu0 %v2976_v54, %s2695_s19  ;;  %v1066_v54 = vpack.c.bf16 %v1045_v51, %v1044_v24  ;;  %v2670_v51 = vld [vmem:[%s3553_s3 + $0x88] sm:$0xff]  }
  0x80   : > { %596 = vrot.lane.b32.xlu1 %v553_v19, %s2695_s19 }
  0x81   : > { %1082 = vst.msk [vmem:[#allocation3 + $0x1a8] sm:$0xff] %vm371_vm0, %v1066_v54  ;;  %v859_v54 = vld [vmem:[#allocation2 + $0x169] sm:$0xff] }
  0x82   : > { %v877_v1 = vpack.c.bf16 %v860_v58, %v859_v54 }
  0x83   : > { %1168 = vrot.lane.b32.xlu0 %v552_v26, %s2695_s19  ;;  %v1256_v26 = vpack.c.bf16 %v1233_v6, %v1232_v22  ;;  %v2676_v6 = vld [vmem:[%s3553_s3 + $0xa0] sm:$0xff]  }
  0x84   : > { %975 = vrot.lane.b32.xlu1 %v3017_v29, %s2695_s19  ;;  %v1046_v29 = vld [vmem:[#allocation2 + $0x138] sm:$0xff]  ;;  %893 = vst.msk [vmem:[#allocation3 + $0x240] sm:$0xff] %vm371_vm0, %v877_v1 }
  0x85   : > { %v1067_v62 = vpack.c.bf16 %v1047_v7, %v1046_v29  ;;  %1272 = vst.msk [vmem:[#allocation3 + $0x160] sm:$0xff] %vm371_vm0, %v1256_v26  ;;  %v1240_v7 = vld [vmem:[#allocation2 + $0x152] sm:$0xff]  ;;  %v1246_v26 = vld [vmem:[#allocation2 + $0x19a] sm:$0xff] }
  0x86   : > { %v1263_v30 = vpack.c.bf16 %v1247_v27, %v1246_v26 }
  0x87   : > { %1170 = vrot.lane.b32.xlu0 %v553_v19, %s2695_s19  ;;  %1083 = vst.msk [vmem:[#allocation3 + $0x1d0] sm:$0xff] %vm371_vm0, %v1067_v62  ;;  %v1237_v19 = vld [vmem:[#allocation2 + $0x12a] sm:$0xff]  ;;  %v2673_v62 = vld [vmem:[%s3553_s3 + $0xd8] sm:$0xff]  }
  0x88   : > { %977 = vrot.lane.b32.xlu1 %v3033_v37, %s2695_s19  ;;  %v874_v37 = vpack.c.bf16 %v854_v8, %v853_v5  ;;  %v1241_v5 = vld [vmem:[#allocation2 + $0x15a] sm:$0xff]  ;;  %1279 = vst.msk [vmem:[#allocation3 + $0x278] sm:$0xff] %vm371_vm0, %v1263_v30 }
  0x89   : > { %v1260_v8 = vpack.c.bf16 %v1241_v5, %v1240_v7 }
  0x8a   : > { %890 = vst.msk [vmem:[#allocation3 + $0x1c8] sm:$0xff] %vm371_vm0, %v874_v37  ;;  %v1242_v37 = vld [vmem:[#allocation2 + $0x16a] sm:$0xff] }
  0x8b   : > { %1172 = vrot.lane.b32.xlu0 %v2905_v40, %s2695_s19  ;;  %v1229_v40 = vld [vmem:[#allocation2 + $0xca] sm:$0xff]  ;;  %1276 = vst.msk [vmem:[#allocation3 + $0x200] sm:$0xff] %vm371_vm0, %v1260_v8 }
  0x8c   : > { %979 = vrot.lane.b32.xlu1 %v3053_v55, %s2695_s19  ;;  %v1254_v11 = vpack.c.bf16 %v1229_v40, %v1228_v60  ;;  %v1048_v55 = vld [vmem:[#allocation2 + $0x150] sm:$0xff] }
  0x8d   : > { %v1068_v15 = vpack.c.bf16 %v1049_v14, %v1048_v55  ;;  %v1243_v60 = vld [vmem:[#allocation2 + $0x172] sm:$0xff] }
  0x8e   : > { %1270 = vst.msk [vmem:[#allocation3 + $0x110] sm:$0xff] %vm371_vm0, %v1254_v11  ;;  %v1261_v0 = vpack.c.bf16 %v1243_v60, %v1242_v37  ;;  %v2674_v14 = vld [vmem:[%s3553_s3 + $0x98] sm:$0xff]  }
  0x8f   : > { %1174 = vrot.lane.b32.xlu0 %v2935_v9, %s2695_s19  ;;  %v855_v9 = vld [vmem:[#allocation2 + $0x139] sm:$0xff]  ;;  %1084 = vst.msk [vmem:[#allocation3 + $0x1f8] sm:$0xff] %vm371_vm0, %v1068_v15 }
  0x90   : > { %981 = vrot.lane.b32.xlu1 %v3046_v47, %s2695_s19  ;;  %v856_v47 = vld [vmem:[#allocation2 + $0x141] sm:$0xff]  ;;  %1277 = vst.msk [vmem:[#allocation3 + $0x228] sm:$0xff] %vm371_vm0, %v1261_v0 }
  0x91   : > { %v875_v20 = vpack.c.bf16 %v856_v47, %v855_v9  ;;  %v1054_v9 = vld [vmem:[#allocation2 + $0x198] sm:$0xff]  ;;  %v1055_v15 = vld [vmem:[#allocation2 + $0x1a0] sm:$0xff] }
  0x92   : > { %v2675_v47 = vld [vmem:[%s3553_s3 + $0xe0] sm:$0xff]  }
  0x93   : > { %1176 = vrot.lane.b32.xlu0 %v2979_v2, %s2695_s19  ;;  %v1118_v2 = vld [vmem:[#allocation2 + $0x199] sm:$0xff]  ;;  %891 = vst.msk [vmem:[#allocation3 + $0x1f0] sm:$0xff] %vm371_vm0, %v875_v20 }
  0x94   : > { %983 = vrot.lane.b32.xlu1 %v3073_v10, %s2695_s19  ;;  %v1119_v10 = vld [vmem:[#allocation2 + $0x1a1] sm:$0xff] }
  0x95   : > { %v792_v16 = vpop.permute.xlu0 %791 }
  0x96   : > { %827 = vst.msk [vmem:[#allocation3 + $0x1e8] sm:$0xff] %vm622_vm3, %v792_v16  ;;  %v768_v21 = vpop.permute.xlu1 %767  ;;  %v1071_v16 = vpack.c.bf16 %v1055_v15, %v1054_v9 }
  0x97   : > { %815 = vst.msk [vmem:[#allocation3 + $0x8] sm:$0xff] %vm622_vm3, %v768_v21  ;;  %1178 = vrot.lane.b32.xlu0 %v3010_v23, %s2695_s19  ;;  %v1135_v23 = vpack.c.bf16 %v1119_v10, %v1118_v2  ;;  %v2677_v10 = vld [vmem:[%s3553_s3 + $0xe8] sm:$0xff]  }
  0x98   : > { %985 = vrot.lane.b32.xlu1 %v3095_v25, %s2695_s19  ;;  %v876_v25 = vpack.c.bf16 %v858_v38, %v857_v36  ;;  %1087 = vst.msk [vmem:[#allocation3 + $0x270] sm:$0xff] %vm371_vm0, %v1071_v16  ;;  %v2678_v36 = vld [vmem:[%s3553_s3 + $0xa8] sm:$0xff]   ;;  %v2679_v38 = vld [vmem:[%s3553_s3 + $0xf0] sm:$0xff]  }
  0x99   : > { %v599_v34 = vpop.permute.xlu0 %598 }
  0x9a   : > { %635 = vst.msk [vmem:[#allocation3 + $0x1e0] sm:$0xff] %vm622_vm3, %v599_v34  ;;  %v575_v31 = vpop.permute.xlu1 %574 }
  0x9b   : > { %623 = vst.msk [vmem:[#allocation3] sm:$0xff] %vm622_vm3, %v575_v31  ;;  %1180 = vrot.lane.b32.xlu0 %v3114_v56, %s2695_s19  ;;  %v2667_v56 = vld [vmem:[%s3553_s3 + $0x80] sm:$0xff]  }
  0x9c   : > { %987 = vrot.lane.b32.xlu1 %v3101_v32, %s2695_s19  ;;  %892 = vst.msk [vmem:[#allocation3 + $0x218] sm:$0xff] %vm371_vm0, %v876_v25  ;;  %v1236_v32 = vld [vmem:[#allocation2 + $0x122] sm:$0xff] }
  0x9d   : > { %v794_v39 = vpop.permute.xlu0 %793  ;;  %v1341_v41 = vld [vmem:[#allocation3 + $0x1e8] sm:$0xff]  ;;  %v1258_v44 = vpack.c.bf16 %v1237_v19, %v1236_v32 }
  0x9e   : > { %828 = vst.msk [vmem:[#allocation3 + $0x210] sm:$0xff] %vm622_vm3, %v794_v39  ;;  %1831 = vmatprep.mubr.bf16.mxu1 %v1341_v41  ;;  %v601_v42 = vpop.permute.xlu1 %600  ;;  %v1281_v33 = vld [vmem:[#allocation3 + $0x8] sm:$0xff] }
  0x9f   : > { %636 = vst.msk [vmem:[#allocation3 + $0x208] sm:$0xff] %vm622_vm3, %v601_v42  ;;  %1735 = vmatprep.mubr.bf16.mxu0 %v1281_v33  ;;  %1182 = vrot.lane.b32.xlu0 %v1135_v23, %s2695_s19  ;;  %v2680_v33 = vld [vmem:[%s3553_s3 + $0xb0] sm:$0xff]  }
  0xa0   : > { %989 = vrot.lane.b32.xlu1 %v3130_v17, %s2695_s19  ;;  %1274 = vst.msk [vmem:[#allocation3 + $0x1b0] sm:$0xff] %vm371_vm0, %v1258_v44  ;;  %v1052_v17 = vld [vmem:[#allocation2 + $0x180] sm:$0xff] }
  0xa1   : > { %v770_v46 = vpop.permute.xlu0 %769  ;;  %v1340_v48 = vld [vmem:[#allocation3 + $0x1e0] sm:$0xff]  ;;  %v1070_v57 = vpack.c.bf16 %v1053_v52, %v1052_v17 }
  0xa2   : > { %816 = vst.msk [vmem:[#allocation3 + $0x30] sm:$0xff] %vm622_vm3, %v770_v46  ;;  %1832 = vmatmul.mubr.bf16.vlgmr.msra.gmra.mrb[0].mxu1 %v1340_v48  ;;  %v577_v35 = vpop.permute.xlu1 %576  ;;  %v1280_v24 = vld [vmem:[#allocation3] sm:$0xff] }
  0xa3   : > { %2453 = vmatpush3.bf16.msra.mxu1 %v2667_v56  ;;  %624 = vst.msk [vmem:[#allocation3 + $0x28] sm:$0xff] %vm622_vm3, %v577_v35  ;;  %1736 = vmatmul.mubr.bf16.vlgmr.msra.gmra.mrb[0].mxu0 %v1280_v24  ;;  %v2681_v56 = vld [vmem:[%s3553_s3 + $0xf8] sm:$0xff]  }
  0xa4   : > { %2454 = vmatprep.subr.bf16.mxu1 %v2668_v43  ;;  %2585 = vmatpush3.bf16.msra.mxu0 %v3090_v18  ;;  %v2672_v18 = vld [vmem:[%s3553_s3 + $0x90] sm:$0xff]   ;;  %1086 = vst.msk [vmem:[#allocation3 + $0x248] sm:$0xff] %vm371_vm0, %v1070_v57 }
  0xa5   : > { %v796_v59 = vpop.permute.xlu0 %795  ;;  %v1346_v61 = vld [vmem:[#allocation3 + $0x210] sm:$0xff]  ;;  %2586 = vmatprep.subr.bf16.mxu0 %v2682_v49 }
  0xa6   : > { %829 = vst.msk [vmem:[#allocation3 + $0x238] sm:$0xff] %vm622_vm3, %v796_v59  ;;  %v603_v3 = vpop.permute.xlu1 %602  ;;  %1839 = vmatprep.mubr.bf16.mxu1 %v1346_v61  ;;  %v1345_v29 = vld [vmem:[#allocation3 + $0x208] sm:$0xff] }
  0xa7   : > { %2455 = vmatpush3.bf16.msra.mxu1 %v2670_v51  ;;  %637 = vst.msk [vmem:[#allocation3 + $0x230] sm:$0xff] %vm622_vm3, %v603_v3 }
  0xa8   : > { %2456 = vmatprep.subr.bf16.mxu1 %v2671_v53  ;;  %2587 = vmatpush3.bf16.msra.mxu0 %v2682_v49 }
  0xa9   : > { %v772_v40 = vpop.permute.xlu0 %771  ;;  %v1286_v11 = vld [vmem:[#allocation3 + $0x30] sm:$0xff]  ;;  %2588 = vmatprep.subr.bf16.mxu0 %v2684_v63 }
  0xaa   : > { %817 = vst.msk [vmem:[#allocation3 + $0x58] sm:$0xff] %vm622_vm3, %v772_v40  ;;  %1743 = vmatprep.mubr.bf16.mxu0 %v1286_v11  ;;  %1840 = vmatmul.mubr.bf16.gmra.mrb[4].mxu1 %v1345_v29  ;;  %v579_v13 = vpop.permute.xlu1 %578  ;;  %v1285_v55 = vld [vmem:[#allocation3 + $0x28] sm:$0xff] }
  0xab   : > { %2457 = vmatpush3.bf16.msra.mxu1 %v2672_v18  ;;  %625 = vst.msk [vmem:[#allocation3 + $0x50] sm:$0xff] %vm622_vm3, %v579_v13  ;;  %1744 = vmatmul.mubr.bf16.gmra.mrb[4].mxu0 %v1285_v55 }
  0xac   : > { %2458 = vmatprep.subr.bf16.mxu1 %v2673_v62  ;;  %2589 = vmatpush3.bf16.msra.mxu0 %v2684_v63 }
  0xad   : > { %v798_v20 = vpop.permute.xlu0 %797  ;;  %v1351_v21 = vld [vmem:[#allocation3 + $0x238] sm:$0xff]  ;;  %2590 = vmatprep.subr.bf16.mxu0 %v2685_v12 }
  0xae   : > { %830 = vst.msk [vmem:[#allocation3 + $0x260] sm:$0xff] %vm622_vm3, %v798_v20  ;;  %v605_v2 = vpop.permute.xlu1 %604  ;;  %1847 = vmatprep.mubr.bf16.mxu1 %v1351_v21  ;;  %v1350_v22 = vld [vmem:[#allocation3 + $0x230] sm:$0xff] }
  0xaf   : > { %2459 = vmatpush3.bf16.msra.mxu1 %v2674_v14  ;;  %638 = vst.msk [vmem:[#allocation3 + $0x258] sm:$0xff] %vm622_vm3, %v605_v2 }
  0xb0   : > { %2460 = vmatprep.subr.bf16.mxu1 %v2675_v47  ;;  %2591 = vmatpush3.bf16.msra.mxu0 %v2685_v12 }
  0xb1   : > { %v774_v28 = vpop.permute.xlu0 %773  ;;  %v1291_v34 = vld [vmem:[#allocation3 + $0x58] sm:$0xff] }
  0xb2   : > { %818 = vst.msk [vmem:[#allocation3 + $0x80] sm:$0xff] %vm622_vm3, %v774_v28  ;;  %1848 = vmatmul.mubr.bf16.gmra.mrb[8].mxu1 %v1350_v22  ;;  %v581_v31 = vpop.permute.xlu1 %580  ;;  %1751 = vmatprep.mubr.bf16.mxu0 %v1291_v34  ;;  %v1290_v23 = vld [vmem:[#allocation3 + $0x50] sm:$0xff] }
  0xb3   : > { %2461 = vmatpush3.bf16.msra.mxu1 %v2676_v6  ;;  %626 = vst.msk [vmem:[#allocation3 + $0x78] sm:$0xff] %vm622_vm3, %v581_v31  ;;  %1752 = vmatmul.mubr.bf16.gmra.mrb[8].mxu0 %v1290_v23 }
  0xb4   : > { %2462 = vmatprep.subr.bf16.mxu1 %v2677_v10 }
  0xb5   : > { %v1153_v25 = vpop.permute.xlu0 %1152  ;;  %v1356_v39 = vld [vmem:[#allocation3 + $0x260] sm:$0xff] }
  0xb6   : > { %1200 = vst.msk [vmem:[#allocation3 + $0x18] sm:$0xff] %vm622_vm3, %v1153_v25  ;;  %v960_v41 = vpop.permute.xlu1 %959  ;;  %1855 = vmatprep.mubr.bf16.mxu1 %v1356_v39  ;;  %v1355_v42 = vld [vmem:[#allocation3 + $0x258] sm:$0xff] }
  0xb7   : > { %2463 = vmatpush3.bf16.msra.mxu1 %v2678_v36  ;;  %1007 = vst.msk [vmem:[#allocation3 + $0x10] sm:$0xff] %vm622_vm3, %v960_v41 }
  0xb8   : > { %2464 = vmatprep.subr.bf16.mxu1 %v2679_v38 }
  0xb9   : > { %v776_v32 = vpop.permute.xlu0 %775  ;;  %v1296_v19 = vld [vmem:[#allocation3 + $0x80] sm:$0xff] }
  0xba   : > { %819 = vst.msk [vmem:[#allocation3 + $0xa8] sm:$0xff] %vm622_vm3, %v776_v32  ;;  %1856 = vmatmul.mubr.bf16.gmra.mrb[12].mxu1 %v1355_v42  ;;  %v583_v43 = vpop.permute.xlu1 %582  ;;  %1759 = vmatprep.mubr.bf16.mxu0 %v1296_v19  ;;  %v1295_v44 = vld [vmem:[#allocation3 + $0x78] sm:$0xff] }
  0xbb   : > { %2465 = vmatpush3.bf16.msra.mxu1 %v2680_v33  ;;  %627 = vst.msk [vmem:[#allocation3 + $0xa0] sm:$0xff] %vm622_vm3, %v583_v43  ;;  %1760 = vmatmul.mubr.bf16.gmra.mrb[12].mxu0 %v1295_v44  ;;  %v1284_v44 = vld [vmem:[#allocation3 + $0x20] sm:$0xff] }
  0xbc   : > { %2466 = vmatprep.subr.bf16.mxu1 %v2681_v56 }
  0xbd   : > { %v1155_v4 = vpop.permute.xlu0 %1154  ;;  %v1283_v46 = vld [vmem:[#allocation3 + $0x18] sm:$0xff] }
  0xbe   : > { %1201 = vst.msk [vmem:[#allocation3 + $0x40] sm:$0xff] %vm622_vm3, %v1155_v4  ;;  %v962_v48 = vpop.permute.xlu1 %961  ;;  %1896 = vmatprep.mubr.bf16.mxu1 %v1283_v46  ;;  %v1282_v49 = vld [vmem:[#allocation3 + $0x10] sm:$0xff] }
  0xbf   : > { %2467 = vmatpush3.bf16.msra.mxu1 %v2683_v45  ;;  %1008 = vst.msk [vmem:[#allocation3 + $0x38] sm:$0xff] %vm622_vm3, %v962_v48 }
  0xc1   : > { %v778_v50 = vpop.permute.xlu0 %777  ;;  %v1301_v35 = vld [vmem:[#allocation3 + $0xa8] sm:$0xff] }
  0xc2   : > { %820 = vst.msk [vmem:[#allocation3 + $0xd0] sm:$0xff] %vm622_vm3, %v778_v50  ;;  %1897 = vmatmul.mubr.bf16.vlgmr.msra.gmra.mrb[16].mxu1 %v1282_v49  ;;  %v585_v24 = vpop.permute.xlu1 %584  ;;  %1767 = vmatprep.mubr.bf16.mxu0 %v1301_v35  ;;  %v1300_v51 = vld [vmem:[#allocation3 + $0xa0] sm:$0xff]  ;;  %v1289_v35 = vld [vmem:[#allocation3 + $0x48] sm:$0xff] }
  0xc3   : > { %628 = vst.msk [vmem:[#allocation3 + $0xc8] sm:$0xff] %vm622_vm3, %v585_v24  ;;  %1768 = vmatmul.mubr.bf16.gmra.mrb[16].mxu0 %v1300_v51  ;;  %v1294_v51 = vld [vmem:[#allocation3 + $0x70] sm:$0xff] }
  0xc5   : > { %v1157_v17 = vpop.permute.xlu0 %1156  ;;  %v1288_v52 = vld [vmem:[#allocation3 + $0x40] sm:$0xff] }
  0xc6   : > { %1202 = vst.msk [vmem:[#allocation3 + $0x68] sm:$0xff] %vm622_vm3, %v1157_v17  ;;  %v964_v54 = vpop.permute.xlu1 %963  ;;  %1904 = vmatprep.mubr.bf16.mxu1 %v1288_v52  ;;  %v1287_v53 = vld [vmem:[#allocation3 + $0x38] sm:$0xff] }
  0xc7   : > { %1009 = vst.msk [vmem:[#allocation3 + $0x60] sm:$0xff] %vm622_vm3, %v964_v54 }
  0xc9   : > { %v780_v57 = vpop.permute.xlu0 %779  ;;  %v1306_v58 = vld [vmem:[#allocation3 + $0xd0] sm:$0xff] }
  0xca   : > { %821 = vst.msk [vmem:[#allocation3 + $0xf8] sm:$0xff] %vm622_vm3, %v780_v57  ;;  %1905 = vmatmul.mubr.bf16.gmra.mrb[20].mxu1 %v1287_v53  ;;  %v587_v59 = vpop.permute.xlu1 %586  ;;  %1775 = vmatprep.mubr.bf16.mxu0 %v1306_v58  ;;  %v1305_v61 = vld [vmem:[#allocation3 + $0xc8] sm:$0xff]  ;;  %v1299_v58 = vld [vmem:[#allocation3 + $0x98] sm:$0xff] }
  0xcb   : > { %629 = vst.msk [vmem:[#allocation3 + $0xf0] sm:$0xff] %vm622_vm3, %v587_v59  ;;  %1776 = vmatmul.mubr.bf16.gmra.mrb[20].mxu0 %v1305_v61  ;;  %v1304_v61 = vld [vmem:[#allocation3 + $0xc0] sm:$0xff] }
  0xcd   : > { %v1159_v63 = vpop.permute.xlu0 %1158  ;;  %v1293_v1 = vld [vmem:[#allocation3 + $0x68] sm:$0xff] }
  0xce   : > { %1203 = vst.msk [vmem:[#allocation3 + $0x90] sm:$0xff] %vm622_vm3, %v1159_v63  ;;  %v966_v3 = vpop.permute.xlu1 %965  ;;  %1912 = vmatprep.mubr.bf16.mxu1 %v1293_v1  ;;  %v1292_v18 = vld [vmem:[#allocation3 + $0x60] sm:$0xff] }
  0xcf   : > { %1010 = vst.msk [vmem:[#allocation3 + $0x88] sm:$0xff] %vm622_vm3, %v966_v3 }
  0xd1   : > { %v782_v29 = vpop.permute.xlu0 %781  ;;  %v1311_v7 = vld [vmem:[#allocation3 + $0xf8] sm:$0xff] }
  0xd2   : > { %822 = vst.msk [vmem:[#allocation3 + $0x120] sm:$0xff] %vm622_vm3, %v782_v29  ;;  %1913 = vmatmul.mubr.bf16.gmra.mrb[24].mxu1 %v1292_v18  ;;  %v589_v5 = vpop.permute.xlu1 %588  ;;  %1783 = vmatprep.mubr.bf16.mxu0 %v1311_v7  ;;  %v1310_v62 = vld [vmem:[#allocation3 + $0xf0] sm:$0xff]  ;;  %v1309_v7 = vld [vmem:[#allocation3 + $0xe8] sm:$0xff] }
  0xd3   : > { %630 = vst.msk [vmem:[#allocation3 + $0x118] sm:$0xff] %vm622_vm3, %v589_v5  ;;  %1784 = vmatmul.mubr.bf16.gmra.mrb[24].mxu0 %v1310_v62  ;;  %v1314_v62 = vld [vmem:[#allocation3 + $0x110] sm:$0xff] }
  0xd5   : > { %v1161_v8 = vpop.permute.xlu0 %1160  ;;  %v1298_v37 = vld [vmem:[#allocation3 + $0x90] sm:$0xff] }
  0xd6   : > { %1204 = vst.msk [vmem:[#allocation3 + $0xb8] sm:$0xff] %vm622_vm3, %v1161_v8  ;;  %v968_v60 = vpop.permute.xlu1 %967  ;;  %1920 = vmatprep.mubr.bf16.mxu1 %v1298_v37  ;;  %v1297_v40 = vld [vmem:[#allocation3 + $0x88] sm:$0xff] }
  0xd7   : > { %1011 = vst.msk [vmem:[#allocation3 + $0xb0] sm:$0xff] %vm622_vm3, %v968_v60 }
  0xd9   : > { %v784_v11 = vpop.permute.xlu0 %783  ;;  %v1316_v12 = vld [vmem:[#allocation3 + $0x120] sm:$0xff] }
  0xda   : > { %823 = vst.msk [vmem:[#allocation3 + $0x148] sm:$0xff] %vm622_vm3, %v784_v11  ;;  %1921 = vmatmul.mubr.bf16.gmra.mrb[28].mxu1 %v1297_v40  ;;  %v591_v0 = vpop.permute.xlu1 %590  ;;  %1791 = vmatprep.mubr.bf16.mxu0 %v1316_v12  ;;  %v1315_v13 = vld [vmem:[#allocation3 + $0x118] sm:$0xff]  ;;  %v1324_v12 = vld [vmem:[#allocation3 + $0x160] sm:$0xff] }
  0xdb   : > { %631 = vst.msk [vmem:[#allocation3 + $0x140] sm:$0xff] %vm622_vm3, %v591_v0  ;;  %1792 = vmatmul.mubr.bf16.gmra.mrb[28].mxu0 %v1315_v13  ;;  %v1319_v40 = vld [vmem:[#allocation3 + $0x138] sm:$0xff]  ;;  %v1329_v13 = vld [vmem:[#allocation3 + $0x188] sm:$0xff] }
  0xdd   : > { %v1163_v55 = vpop.permute.xlu0 %1162  ;;  %v1303_v14 = vld [vmem:[#allocation3 + $0xb8] sm:$0xff] }
  0xde   : > { %1205 = vst.msk [vmem:[#allocation3 + $0xe0] sm:$0xff] %vm622_vm3, %v1163_v55  ;;  %v970_v9 = vpop.permute.xlu1 %969  ;;  %1928 = vmatprep.mubr.bf16.mxu1 %v1303_v14  ;;  %v1302_v15 = vld [vmem:[#allocation3 + $0xb0] sm:$0xff] }
  0xdf   : > { %1012 = vst.msk [vmem:[#allocation3 + $0xd8] sm:$0xff] %vm622_vm3, %v970_v9  ;;  %v1334_v14 = vld [vmem:[#allocation3 + $0x1b0] sm:$0xff] }
  0xe1   : > { %v786_v47 = vpop.permute.xlu0 %785  ;;  %v1321_v16 = vld [vmem:[#allocation3 + $0x148] sm:$0xff] }
  0xe2   : > { %824 = vst.msk [vmem:[#allocation3 + $0x170] sm:$0xff] %vm622_vm3, %v786_v47  ;;  %1929 = vmatmul.mubr.bf16.gmra.mrb[32].mxu1 %v1302_v15  ;;  %v593_v20 = vpop.permute.xlu1 %592  ;;  %1799 = vmatprep.mubr.bf16.mxu0 %v1321_v16  ;;  %v1320_v21 = vld [vmem:[#allocation3 + $0x140] sm:$0xff]  ;;  %v1339_v15 = vld [vmem:[#allocation3 + $0x1d8] sm:$0xff] }
  0xe3   : > { %632 = vst.msk [vmem:[#allocation3 + $0x168] sm:$0xff] %vm622_vm3, %v593_v20  ;;  %1800 = vmatmul.mubr.bf16.gmra.mrb[32].mxu0 %v1320_v21  ;;  %v1344_v16 = vld [vmem:[#allocation3 + $0x200] sm:$0xff]  ;;  %v1349_v21 = vld [vmem:[#allocation3 + $0x228] sm:$0xff] }
  0xe5   : > { %v1165_v2 = vpop.permute.xlu0 %1164  ;;  %v1308_v22 = vld [vmem:[#allocation3 + $0xe0] sm:$0xff] }
  0xe6   : > { %1206 = vst.msk [vmem:[#allocation3 + $0x108] sm:$0xff] %vm622_vm3, %v1165_v2  ;;  %v972_v6 = vpop.permute.xlu1 %971  ;;  %1936 = vmatprep.mubr.bf16.mxu1 %v1308_v22  ;;  %v1307_v10 = vld [vmem:[#allocation3 + $0xd8] sm:$0xff]  ;;  %v1354_v22 = vld [vmem:[#allocation3 + $0x250] sm:$0xff] }
  0xe7   : > { %1013 = vst.msk [vmem:[#allocation3 + $0x100] sm:$0xff] %vm622_vm3, %v972_v6 }
  0xe9   : > { %v788_v26 = vpop.permute.xlu0 %787  ;;  %v1326_v27 = vld [vmem:[#allocation3 + $0x170] sm:$0xff] }
  0xea   : > { %825 = vst.msk [vmem:[#allocation3 + $0x198] sm:$0xff] %vm622_vm3, %v788_v26  ;;  %1937 = vmatmul.mubr.bf16.gmra.mrb[36].mxu1 %v1307_v10  ;;  %v595_v28 = vpop.permute.xlu1 %594  ;;  %1807 = vmatprep.mubr.bf16.mxu0 %v1326_v27  ;;  %v1325_v34 = vld [vmem:[#allocation3 + $0x168] sm:$0xff]  ;;  %v1359_v10 = vld [vmem:[#allocation3 + $0x278] sm:$0xff] }
  0xeb   : > { %633 = vst.msk [vmem:[#allocation3 + $0x190] sm:$0xff] %vm622_vm3, %v595_v28  ;;  %1808 = vmatmul.mubr.bf16.gmra.mrb[36].mxu0 %v1325_v34 }
  0xed   : > { %v1167_v30 = vpop.permute.xlu0 %1166  ;;  %v1313_v31 = vld [vmem:[#allocation3 + $0x108] sm:$0xff] }
  0xee   : > { %1207 = vst.msk [vmem:[#allocation3 + $0x130] sm:$0xff] %vm622_vm3, %v1167_v30  ;;  %v974_v23 = vpop.permute.xlu1 %973  ;;  %1944 = vmatprep.mubr.bf16.mxu1 %v1313_v31  ;;  %v1312_v36 = vld [vmem:[#allocation3 + $0x100] sm:$0xff] }
  0xef   : > { %1014 = vst.msk [vmem:[#allocation3 + $0x128] sm:$0xff] %vm622_vm3, %v974_v23 }
  0xf1   : > { %v790_v38 = vpop.permute.xlu0 %789  ;;  %v1331_v25 = vld [vmem:[#allocation3 + $0x198] sm:$0xff] }
  0xf2   : > { %826 = vst.msk [vmem:[#allocation3 + $0x1c0] sm:$0xff] %vm622_vm3, %v790_v38  ;;  %1945 = vmatmul.mubr.bf16.gmra.mrb[40].mxu1 %v1312_v36  ;;  %v597_v39 = vpop.permute.xlu1 %596  ;;  %1815 = vmatprep.mubr.bf16.mxu0 %v1331_v25  ;;  %v1330_v41 = vld [vmem:[#allocation3 + $0x190] sm:$0xff] }
  0xf3   : > { %634 = vst.msk [vmem:[#allocation3 + $0x1b8] sm:$0xff] %vm622_vm3, %v597_v39  ;;  %1816 = vmatmul.mubr.bf16.gmra.mrb[40].mxu0 %v1330_v41 }
  0xf5   : > { %v1169_v42 = vpop.permute.xlu0 %1168  ;;  %v1318_v33 = vld [vmem:[#allocation3 + $0x130] sm:$0xff] }
  0xf6   : > { %1208 = vst.msk [vmem:[#allocation3 + $0x158] sm:$0xff] %vm622_vm3, %v1169_v42  ;;  %1952 = vmatprep.mubr.bf16.mxu1 %v1318_v33  ;;  %v976_v56 = vpop.permute.xlu1 %975  ;;  %v1317_v32 = vld [vmem:[#allocation3 + $0x128] sm:$0xff] }
  0xf7   : > { %1015 = vst.msk [vmem:[#allocation3 + $0x150] sm:$0xff] %vm622_vm3, %v976_v56 }
  0xf9   : > { %v1336_v19 = vld [vmem:[#allocation3 + $0x1c0] sm:$0xff]  ;;  %v1171_v43 = vpop.permute.xlu0 %1170 }
  0xfa   : > { %1823 = vmatprep.mubr.bf16.mxu0 %v1336_v19  ;;  %1953 = vmatmul.mubr.bf16.gmra.mrb[44].mxu1 %v1317_v32  ;;  %v1335_v45 = vld [vmem:[#allocation3 + $0x1b8] sm:$0xff]  ;;  %1209 = vst.msk [vmem:[#allocation3 + $0x180] sm:$0xff] %vm622_vm3, %v1171_v43  ;;  %v978_v4 = vpop.permute.xlu1 %977 }
  0xfb   : > { %1824 = vmatmul.mubr.bf16.gmra.mrb[44].mxu0 %v1335_v45  ;;  %1016 = vst.msk [vmem:[#allocation3 + $0x178] sm:$0xff] %vm622_vm3, %v978_v4 }
  0xfc   : > { %2592 = vmatprep.mubr.msk.bf16.mxu0 %vm371_vm0, %v1284_v44 }
  0xfd   : > { %v1323_v46 = vld [vmem:[#allocation3 + $0x158] sm:$0xff]  ;;  %v1173_v48 = vpop.permute.xlu0 %1172 }
  0xfe   : > { %1960 = vmatprep.mubr.bf16.mxu1 %v1323_v46  ;;  %1210 = vst.msk [vmem:[#allocation3 + $0x1a8] sm:$0xff] %vm622_vm3, %v1173_v48  ;;  %v980_v49 = vpop.permute.xlu1 %979  ;;  %v1322_v50 = vld [vmem:[#allocation3 + $0x150] sm:$0xff] }
  0xff   : > { %1017 = vst.msk [vmem:[#allocation3 + $0x1a0] sm:$0xff] %vm622_vm3, %v980_v49 }
 0x101   : > { %v1328_v24 = vld [vmem:[#allocation3 + $0x180] sm:$0xff]  ;;  %v1175_v17 = vpop.permute.xlu0 %1174 }
 0x102   : > { %1961 = vmatmul.mubr.bf16.gmra.mrb[48].mxu1 %v1322_v50  ;;  %1211 = vst.msk [vmem:[#allocation3 + $0x1d0] sm:$0xff] %vm622_vm3, %v1175_v17  ;;  %v982_v52 = vpop.permute.xlu1 %981  ;;  %v1327_v57 = vld [vmem:[#allocation3 + $0x178] sm:$0xff] }
 0x103   : > { %2593 = vmatmul.mubr.msk.bf16.vlgmr.msra.gmra.mrb[48].mxu0 %vm371_vm0, %v1289_v35  ;;  %1968 = vmatprep.mubr.bf16.mxu1 %v1328_v24  ;;  %1018 = vst.msk [vmem:[#allocation3 + $0x1c8] sm:$0xff] %vm622_vm3, %v982_v52 }
 0x104   : > { %2596 = vmatprep.mubr.msk.bf16.mxu0 %vm371_vm0, %v1294_v51 }
 0x105   : > { %v1177_v54 = vpop.permute.xlu0 %1176  ;;  %v1333_v59 = vld [vmem:[#allocation3 + $0x1a8] sm:$0xff] }
 0x106   : > { %1212 = vst.msk [vmem:[#allocation3 + $0x1f8] sm:$0xff] %vm622_vm3, %v1177_v54  ;;  %v984_v53 = vpop.permute.xlu1 %983  ;;  %v1332_v29 = vld [vmem:[#allocation3 + $0x1a0] sm:$0xff] }
 0x107   : > { %1019 = vst.msk [vmem:[#allocation3 + $0x1f0] sm:$0xff] %vm622_vm3, %v984_v53 }
 0x109   : > { %v1179_v63 = vpop.permute.xlu0 %1178  ;;  %v1338_v5 = vld [vmem:[#allocation3 + $0x1d0] sm:$0xff] }
 0x10a   : > { %1969 = vmatmul.mubr.bf16.gmra.mrb[52].mxu1 %v1327_v57  ;;  %1213 = vst.msk [vmem:[#allocation3 + $0x220] sm:$0xff] %vm622_vm3, %v1179_v63  ;;  %v986_v1 = vpop.permute.xlu1 %985  ;;  %v1337_v60 = vld [vmem:[#allocation3 + $0x1c8] sm:$0xff] }
 0x10b   : > { %2597 = vmatmul.mubr.msk.bf16.gmra.mrb[52].mxu0 %vm371_vm0, %v1299_v58  ;;  %1976 = vmatprep.mubr.bf16.mxu1 %v1333_v59  ;;  %1020 = vst.msk [vmem:[#allocation3 + $0x218] sm:$0xff] %vm622_vm3, %v986_v1 }
 0x10c   : > { %2600 = vmatprep.mubr.msk.bf16.mxu0 %vm371_vm0, %v1304_v61 }
 0x10d   : > { %v1181_v3 = vpop.permute.xlu0 %1180  ;;  %v1343_v11 = vld [vmem:[#allocation3 + $0x1f8] sm:$0xff] }
 0x10e   : > { %1214 = vst.msk [vmem:[#allocation3 + $0x248] sm:$0xff] %vm622_vm3, %v1181_v3  ;;  %v988_v18 = vpop.permute.xlu1 %987  ;;  %v1342_v0 = vld [vmem:[#allocation3 + $0x1f0] sm:$0xff] }
 0x10f   : > { %1021 = vst.msk [vmem:[#allocation3 + $0x240] sm:$0xff] %vm622_vm3, %v988_v18 }
 0x111   : > { %v1183_v8 = vpop.permute.xlu0 %1182  ;;  %v1348_v55 = vld [vmem:[#allocation3 + $0x220] sm:$0xff] }
 0x112   : > { %1977 = vmatmul.mubr.bf16.gmra.mrb[56].mxu1 %v1332_v29  ;;  %1215 = vst.msk [vmem:[#allocation3 + $0x270] sm:$0xff] %vm622_vm3, %v1183_v8  ;;  %v990_v37 = vpop.permute.xlu1 %989  ;;  %v1347_v9 = vld [vmem:[#allocation3 + $0x218] sm:$0xff] }
 0x113   : > { %2601 = vmatmul.mubr.msk.bf16.gmra.mrb[56].mxu0 %vm371_vm0, %v1309_v7  ;;  %1984 = vmatprep.mubr.bf16.mxu1 %v1338_v5  ;;  %1022 = vst.msk [vmem:[#allocation3 + $0x268] sm:$0xff] %vm622_vm3, %v990_v37 }
 0x114   : > { %2604 = vmatprep.mubr.msk.bf16.mxu0 %vm371_vm0, %v1314_v62 }
 0x115   : > { %v1353_v47 = vld [vmem:[#allocation3 + $0x248] sm:$0xff] }
 0x116   : > { %v1352_v20 = vld [vmem:[#allocation3 + $0x240] sm:$0xff] }
 0x119   : > { %v1358_v2 = vld [vmem:[#allocation3 + $0x270] sm:$0xff] }
 0x11a   : > { %1985 = vmatmul.mubr.bf16.gmra.mrb[60].mxu1 %v1337_v60  ;;  %v1357_v6 = vld [vmem:[#allocation3 + $0x268] sm:$0xff] }
 0x11b   : > { %2605 = vmatmul.mubr.msk.bf16.gmra.mrb[60].mxu0 %vm371_vm0, %v1319_v40  ;;  %1992 = vmatprep.mubr.bf16.mxu1 %v1343_v11 }
 0x11c   : > { %2608 = vmatprep.mubr.msk.bf16.mxu0 %vm371_vm0, %v1324_v12  ;;  %v3391_v12 = vld [vmem:[%s3554_s4] ss:$0 sm:$0xff] }
 0x122   : > { %1993 = vmatmul.mubr.bf16.gmra.mrb[64].mxu1 %v1342_v0 }
 0x123   : > { %2609 = vmatmul.mubr.msk.bf16.gmra.mrb[64].mxu0 %vm371_vm0, %v1329_v13  ;;  %2000 = vmatprep.mubr.bf16.mxu1 %v1348_v55 }
 0x124   : > { %2612 = vmatprep.mubr.msk.bf16.mxu0 %vm371_vm0, %v1334_v14 }
 0x12a   : > { %2001 = vmatmul.mubr.bf16.gmra.mrb[68].mxu1 %v1347_v9 }
 0x12b   : > { %2613 = vmatmul.mubr.msk.bf16.gmra.mrb[68].mxu0 %vm371_vm0, %v1339_v15  ;;  %2008 = vmatprep.mubr.bf16.mxu1 %v1353_v47 }
 0x12c   : > { %2616 = vmatprep.mubr.msk.bf16.mxu0 %vm371_vm0, %v1344_v16 }
 0x132   : > { %2009 = vmatmul.mubr.bf16.gmra.mrb[72].mxu1 %v1352_v20 }
 0x133   : > { %2617 = vmatmul.mubr.msk.bf16.gmra.mrb[72].mxu0 %vm371_vm0, %v1349_v21  ;;  %2016 = vmatprep.mubr.bf16.mxu1 %v1358_v2 }
 0x134   : > { %2620 = vmatprep.mubr.msk.bf16.mxu0 %vm371_vm0, %v1354_v22 }
 0x13a   : > { %2017 = vmatmul.mubr.bf16.gmra.mrb[76].mxu1 %v1357_v6 }
 0x13b   : > { %2621 = vmatmul.mubr.msk.bf16.gmra.mrb[76].mxu0 %vm371_vm0, %v1359_v10 }
 0x175   : > { %v2428_v26 = vpop.f32.mrb[0].mxu1 }
 0x176   : > { %v2356_v27 = vpop.f32.mrb[0].mxu0  ;;  %v2429_v28 = vpop.f32.mrb[1].mxu1 }
 0x177   : > { %v3372_v34 = vadd.f32 %v2429_v28, %v2428_v26  ;;  %v2357_v30 = vpop.f32.mrb[1].mxu0  ;;  %v2431_v31 = vpop.f32.mrb[2].mxu1 }
 0x178   : > { %v2358_v23 = vadd.f32 %v2357_v30, %v2356_v27  ;;  %v2359_v36 = vpop.f32.mrb[2].mxu0  ;;  %v2432_v38 = vpop.f32.mrb[3].mxu1 }
 0x179   : > { %v3374_v25 = vadd.f32 %v2432_v38, %v2431_v31  ;;  %v2360_v39 = vpop.f32.mrb[3].mxu0 }
 0x17a   : > { %v2361_v41 = vadd.f32 %v2360_v39, %v2359_v36  ;;  %v1738_v55 = vadd.f32 %v2358_v23, %v3391_v12 }
 0x17c   : > { %v1741_v21 = vadd.f32 %v2361_v41, %v3391_v12 }
 0x17d   : > { %v2434_v42 = vpop.f32.mrb[4].mxu1 }
 0x17e   : > { %v2362_v33 = vpop.f32.mrb[4].mxu0  ;;  %v2435_v56 = vpop.f32.mrb[5].mxu1 }
 0x17f   : > { %v3376_v32 = vadd.f32 %v2435_v56, %v2434_v42  ;;  %v2363_v19 = vpop.f32.mrb[5].mxu0  ;;  %v2437_v43 = vpop.f32.mrb[6].mxu1 }
 0x180   : > { %v2364_v44 = vadd.f32 %v2363_v19, %v2362_v33  ;;  %v2365_v45 = vpop.f32.mrb[6].mxu0  ;;  %v2438_v4 = vpop.f32.mrb[7].mxu1 }
 0x181   : > { %v3378_v46 = vadd.f32 %v2438_v4, %v2437_v43  ;;  %v2366_v48 = vpop.f32.mrb[7].mxu0 }
 0x182   : > { %v2367_v49 = vadd.f32 %v2366_v48, %v2365_v45  ;;  %v1746_v31 = vadd.f32 %v2364_v44, %v3391_v12 }
 0x184   : > { %v1749_v41 = vadd.f32 %v2367_v49, %v3391_v12 }
 0x185   : > { %v2440_v50 = vpop.f32.mrb[8].mxu1 }
 0x186   : > { %v2368_v35 = vpop.f32.mrb[8].mxu0  ;;  %v2441_v24 = vpop.f32.mrb[9].mxu1 }
 0x187   : > { %v3380_v51 = vadd.f32 %v2441_v24, %v2440_v50  ;;  %v2369_v17 = vpop.f32.mrb[9].mxu0  ;;  %v2443_v52 = vpop.f32.mrb[10].mxu1 }
 0x188   : > { %v2370_v54 = vadd.f32 %v2369_v17, %v2368_v35  ;;  %v2371_v53 = vpop.f32.mrb[10].mxu0  ;;  %v2444_v57 = vpop.f32.mrb[11].mxu1 }
 0x189   : > { %v3382_v58 = vadd.f32 %v2444_v57, %v2443_v52  ;;  %v2372_v59 = vpop.f32.mrb[11].mxu0 }
 0x18a   : > { %v2373_v61 = vadd.f32 %v2372_v59, %v2371_v53  ;;  %v1754_v44 = vadd.f32 %v2370_v54, %v3391_v12 }
 0x18c   : > { %v1757_v49 = vadd.f32 %v2373_v61, %v3391_v12 }
 0x18d   : > { %v2446_v63 = vpop.f32.mrb[12].mxu1 }
 0x18e   : > { %v2374_v1 = vpop.f32.mrb[12].mxu0  ;;  %v2447_v3 = vpop.f32.mrb[13].mxu1 }
 0x18f   : > { %v3384_v18 = vadd.f32 %v2447_v3, %v2446_v63  ;;  %v2375_v29 = vpop.f32.mrb[13].mxu0  ;;  %v2449_v7 = vpop.f32.mrb[14].mxu1 }
 0x190   : > { %v2376_v5 = vadd.f32 %v2375_v29, %v2374_v1  ;;  %v2377_v62 = vpop.f32.mrb[14].mxu0  ;;  %v2450_v8 = vpop.f32.mrb[15].mxu1 }
 0x191   : > { %v3386_v37 = vadd.f32 %v2450_v8, %v2449_v7  ;;  %v2378_v60 = vpop.f32.mrb[15].mxu0 }
 0x192   : > { %v2379_v40 = vadd.f32 %v2378_v60, %v2377_v62  ;;  %v1762_v54 = vadd.f32 %v2376_v5, %v3391_v12 }
 0x194   : > { %v1765_v61 = vadd.f32 %v2379_v40, %v3391_v12 }
 0x195   : > { %v2468_v11 = vpop.f32.mrb[16].mxu1 }
 0x196   : > { %v2380_v0 = vpop.f32.mrb[16].mxu0  ;;  %v2469_v13 = vpop.f32.mrb[17].mxu1 }
 0x197   : > { %v2470_v14 = vadd.f32 %v2469_v13, %v2468_v11  ;;  %v2381_v9 = vpop.f32.mrb[17].mxu0  ;;  %v2471_v15 = vpop.f32.mrb[18].mxu1 }
 0x198   : > { %v2382_v47 = vadd.f32 %v2381_v9, %v2380_v0  ;;  %v2383_v16 = vpop.f32.mrb[18].mxu0  ;;  %v2472_v20 = vpop.f32.mrb[19].mxu1 }
 0x199   : > { %v2473_v2 = vadd.f32 %v2472_v20, %v2471_v15  ;;  %v2384_v22 = vpop.f32.mrb[19].mxu0  ;;  %v3395_v6 = vadd.f32 %v2470_v14, %v1738_v55 }
 0x19a   : > { %v2385_v10 = vadd.f32 %v2384_v22, %v2383_v16  ;;  %v1770_v5 = vadd.f32 %v2382_v47, %v3391_v12 }
 0x19b   : > { %v3397_v26 = vadd.f32 %v2473_v2, %v1741_v21 }
 0x19c   : > { %v1773_v40 = vadd.f32 %v2385_v10, %v3391_v12 }
 0x19d   : > { %v2474_v27 = vpop.f32.mrb[20].mxu1 }
 0x19e   : > { %v2386_v28 = vpop.f32.mrb[20].mxu0  ;;  %v2475_v30 = vpop.f32.mrb[21].mxu1 }
 0x19f   : > { %v2476_v23 = vadd.f32 %v2475_v30, %v2474_v27  ;;  %v2387_v36 = vpop.f32.mrb[21].mxu0  ;;  %v2477_v38 = vpop.f32.mrb[22].mxu1 }
 0x1a0   : > { %v2388_v39 = vadd.f32 %v2387_v36, %v2386_v28  ;;  %v2389_v42 = vpop.f32.mrb[22].mxu0  ;;  %v2478_v33 = vpop.f32.mrb[23].mxu1 }
 0x1a1   : > { %v2479_v56 = vadd.f32 %v2478_v33, %v2477_v38  ;;  %v2390_v19 = vpop.f32.mrb[23].mxu0  ;;  %v3401_v43 = vadd.f32 %v2476_v23, %v1746_v31 }
 0x1a2   : > { %v2391_v45 = vadd.f32 %v2390_v19, %v2389_v42  ;;  %v1778_v47 = vadd.f32 %v2388_v39, %v3391_v12 }
 0x1a3   : > { %v3403_v4 = vadd.f32 %v2479_v56, %v1749_v41 }
 0x1a4   : > { %v1781_v10 = vadd.f32 %v2391_v45, %v3391_v12 }
 0x1a5   : > { %v2480_v48 = vpop.f32.mrb[24].mxu1 }
 0x1a6   : > { %v2392_v50 = vpop.f32.mrb[24].mxu0  ;;  %v2481_v35 = vpop.f32.mrb[25].mxu1 }
 0x1a7   : > { %v2482_v24 = vadd.f32 %v2481_v35, %v2480_v48  ;;  %v2393_v17 = vpop.f32.mrb[25].mxu0  ;;  %v2483_v52 = vpop.f32.mrb[26].mxu1 }
 0x1a8   : > { %v2394_v53 = vadd.f32 %v2393_v17, %v2392_v50  ;;  %v2395_v57 = vpop.f32.mrb[26].mxu0  ;;  %v2484_v59 = vpop.f32.mrb[27].mxu1 }
 0x1a9   : > { %v2485_v63 = vadd.f32 %v2484_v59, %v2483_v52  ;;  %v2396_v1 = vpop.f32.mrb[27].mxu0  ;;  %v3407_v3 = vadd.f32 %v2482_v24, %v1754_v44 }
 0x1aa   : > { %v2397_v29 = vadd.f32 %v2396_v1, %v2395_v57 }
 0x1ab   : > { %v3409_v7 = vadd.f32 %v2485_v63, %v1757_v49 }
 0x1ad   : > { %v2486_v62 = vpop.f32.mrb[28].mxu1 }
 0x1ae   : > { %v2398_v8 = vpop.f32.mrb[28].mxu0  ;;  %v2487_v60 = vpop.f32.mrb[29].mxu1 }
 0x1af   : > { %v2488_v11 = vadd.f32 %v2487_v60, %v2486_v62  ;;  %v2399_v0 = vpop.f32.mrb[29].mxu0  ;;  %v2489_v13 = vpop.f32.mrb[30].mxu1 }
 0x1b0   : > { %v2400_v55 = vadd.f32 %v2399_v0, %v2398_v8  ;;  %v2401_v14 = vpop.f32.mrb[30].mxu0  ;;  %v2490_v9 = vpop.f32.mrb[31].mxu1  ;;  %v1786_v0 = vadd.f32 %v2394_v53, %v3391_v12 }
 0x1b1   : > { %v2491_v15 = vadd.f32 %v2490_v9, %v2489_v13  ;;  %v2402_v16 = vpop.f32.mrb[31].mxu0  ;;  %v3413_v20 = vadd.f32 %v2488_v11, %v1762_v54 }
 0x1b2   : > { %v2403_v21 = vadd.f32 %v2402_v16, %v2401_v14  ;;  %v1789_v16 = vadd.f32 %v2397_v29, %v3391_v12 }
 0x1b3   : > { %v3415_v2 = vadd.f32 %v2491_v15, %v1765_v61 }
 0x1b5   : > { %v2492_v22 = vpop.f32.mrb[32].mxu1 }
 0x1b6   : > { %v2404_v27 = vpop.f32.mrb[32].mxu0  ;;  %v2493_v28 = vpop.f32.mrb[33].mxu1 }
 0x1b7   : > { %v2494_v30 = vadd.f32 %v2493_v28, %v2492_v22  ;;  %v2405_v31 = vpop.f32.mrb[33].mxu0  ;;  %v2495_v23 = vpop.f32.mrb[34].mxu1 }
 0x1b8   : > { %v2406_v36 = vadd.f32 %v2405_v31, %v2404_v27  ;;  %v2407_v38 = vpop.f32.mrb[34].mxu0  ;;  %v2496_v42 = vpop.f32.mrb[35].mxu1 }
 0x1b9   : > { %v2497_v33 = vadd.f32 %v2496_v42, %v2495_v23  ;;  %v2408_v41 = vpop.f32.mrb[35].mxu0  ;;  %v3419_v56 = vadd.f32 %v2494_v30, %v1770_v5 }
 0x1ba   : > { %v2409_v19 = vadd.f32 %v2408_v41, %v2407_v38  ;;  %v1794_v38 = vadd.f32 %v2400_v55, %v3391_v12 }
 0x1bb   : > { %v3421_v48 = vadd.f32 %v2497_v33, %v1773_v40 }
 0x1bd   : > { %v2498_v50 = vpop.f32.mrb[36].mxu1 }
 0x1be   : > { %v2410_v35 = vpop.f32.mrb[36].mxu0  ;;  %v2499_v44 = vpop.f32.mrb[37].mxu1 }
 0x1bf   : > { %v2500_v24 = vadd.f32 %v2499_v44, %v2498_v50  ;;  %v2411_v17 = vpop.f32.mrb[37].mxu0  ;;  %v2501_v52 = vpop.f32.mrb[38].mxu1 }
 0x1c0   : > { %v3424_v57 = vadd.f32 %v2411_v17, %v2410_v35  ;;  %v2413_v59 = vpop.f32.mrb[38].mxu0  ;;  %v2502_v49 = vpop.f32.mrb[39].mxu1  ;;  %v1797_v35 = vadd.f32 %v2403_v21, %v3391_v12  ;;  %v1802_v21 = vadd.f32 %v2406_v36, %v3391_v12 }
 0x1c1   : > { %v2503_v63 = vadd.f32 %v2502_v49, %v2501_v52  ;;  %v2414_v1 = vpop.f32.mrb[39].mxu0  ;;  %v3427_v62 = vadd.f32 %v2500_v24, %v1778_v47 }
 0x1c2   : > { %v3429_v8 = vadd.f32 %v2414_v1, %v2413_v59 }
 0x1c3   : > { %v3431_v60 = vadd.f32 %v2503_v63, %v1781_v10 }
 0x1c5   : > { %v2504_v54 = vpop.f32.mrb[40].mxu1 }
 0x1c6   : > { %v2416_v11 = vpop.f32.mrb[40].mxu0  ;;  %v2505_v39 = vpop.f32.mrb[41].mxu1 }
 0x1c7   : > { %v2506_v13 = vadd.f32 %v2505_v39, %v2504_v54  ;;  %v2417_v14 = vpop.f32.mrb[41].mxu0  ;;  %v2507_v9 = vpop.f32.mrb[42].mxu1 }
 0x1c8   : > { %v3434_v61 = vadd.f32 %v2417_v14, %v2416_v11  ;;  %v2419_v15 = vpop.f32.mrb[42].mxu0  ;;  %v2508_v45 = vpop.f32.mrb[43].mxu1 }
 0x1c9   : > { %v2509_v22 = vadd.f32 %v2508_v45, %v2507_v9  ;;  %v2420_v27 = vpop.f32.mrb[43].mxu0  ;;  %v3437_v28 = vadd.f32 %v2506_v13, %v1786_v0  ;;  %v1805_v13 = vadd.f32 %v2409_v19, %v3391_v12  ;;  %v1810_v19 = vadd.f32 %v3424_v57, %v3391_v12 }
 0x1ca   : > { %v3439_v5 = vadd.f32 %v2420_v27, %v2419_v15 }
 0x1cb   : > { %v3441_v30 = vadd.f32 %v2509_v22, %v1789_v16 }
 0x1cd   : > { %v2510_v31 = vpop.f32.mrb[44].mxu1 }
 0x1ce   : > { %v2422_v23 = vpop.f32.mrb[44].mxu0  ;;  %v2511_v53 = vpop.f32.mrb[45].mxu1 }
 0x1cf   : > { %v2512_v42 = vadd.f32 %v2511_v53, %v2510_v31  ;;  %v2423_v40 = vpop.f32.mrb[45].mxu0  ;;  %v2513_v33 = vpop.f32.mrb[46].mxu1 }
 0x1d0   : > { %v3444_v41 = vadd.f32 %v2423_v40, %v2422_v23  ;;  %v2425_v29 = vpop.f32.mrb[46].mxu0  ;;  %v2514_v50 = vpop.f32.mrb[47].mxu1 }
 0x1d1   : > { %v2515_v44 = vadd.f32 %v2514_v50, %v2513_v33  ;;  %v2426_v47 = vpop.f32.mrb[47].mxu0  ;;  %v3447_v24 = vadd.f32 %v2512_v42, %v1794_v38  ;;  %v1813_v42 = vadd.f32 %v3429_v8, %v3391_v12  ;;  %v1818_v8 = vadd.f32 %v3434_v61, %v3391_v12 }
 0x1d2   : > { %v3449_v17 = vadd.f32 %v2426_v47, %v2425_v29 }
 0x1d3   : > { %v3451_v52 = vadd.f32 %v2515_v44, %v1797_v35 }
 0x1d5   : > { %v2516_v59 = vpop.f32.mrb[48].mxu1 }
 0x1d6   : > { %v2517_v49 = vpop.f32.mrb[49].mxu1  ;;  %v2594_v55 = vpop.f32.mrb[48].mxu0 }
 0x1d7   : > { %v2518_v10 = vadd.f32 %v2517_v49, %v2516_v59  ;;  %v2068_v63 = vadd.f32 %v2594_v55, %v3401_v43  ;;  %v2519_v1 = vpop.f32.mrb[50].mxu1  ;;  %v2059_v54 = vpop.f32.mrb[49].mxu0 }
 0x1d8   : > { %v2060_v11 = vadd.f32 %v2059_v54, %v3395_v6  ;;  %v2520_v39 = vpop.f32.mrb[51].mxu1  ;;  %v2595_v0 = vpop.f32.mrb[50].mxu0 }
 0x1d9   : > { %2188 = vst [vmem:[%s3458_s15 + $0x10] sm:$0xff] %v2068_v63  ;;  %v2521_v14 = vadd.f32 %v2520_v39, %v2519_v1  ;;  %v2071_v9 = vadd.f32 %v2595_v0, %v3403_v4  ;;  %v2062_v15 = vpop.f32.mrb[51].mxu0  ;;  %v3466_v45 = vadd.f32 %v2518_v10, %v1802_v21  ;;  %v1821_v10 = vadd.f32 %v3439_v5, %v3391_v12 }
 0x1da   : > { %2186 = vst [vmem:[%s3458_s15] sm:$0xff] %v2060_v11  ;;  %v2063_v36 = vadd.f32 %v2062_v15, %v3397_v26  ;;  %v1826_v5 = vadd.f32 %v3444_v41, %v3391_v12 }
 0x1db   : > { %2189 = vst [vmem:[%s3458_s15 + $0x18] sm:$0xff] %v2071_v9  ;;  %v3471_v43 = vadd.f32 %v2521_v14, %v1805_v13 }
 0x1dc   : > { %2187 = vst [vmem:[%s3458_s15 + $0x8] sm:$0xff] %v2063_v36 }
 0x1dd   : > { %v2522_v6 = vpop.f32.mrb[52].mxu1 }
 0x1de   : > { %v2523_v16 = vpop.f32.mrb[53].mxu1  ;;  %v2598_v22 = vpop.f32.mrb[52].mxu0 }
 0x1df   : > { %v2524_v4 = vadd.f32 %v2523_v16, %v2522_v6  ;;  %v2084_v27 = vadd.f32 %v2598_v22, %v3413_v20  ;;  %v2525_v31 = vpop.f32.mrb[54].mxu1  ;;  %v2075_v23 = vpop.f32.mrb[53].mxu0  ;;  %v1829_v6 = vadd.f32 %v3449_v17, %v3391_v12  ;;  %v1834_v17 = vadd.f32 %v3372_v34, %v3391_v12 }
 0x1e0   : > { %v2076_v26 = vadd.f32 %v2075_v23, %v3407_v3  ;;  %v2526_v53 = vpop.f32.mrb[55].mxu1  ;;  %v2599_v38 = vpop.f32.mrb[54].mxu0 }
 0x1e1   : > { %2192 = vst [vmem:[%s3458_s15 + $0x30] sm:$0xff] %v2084_v27  ;;  %v2527_v40 = vadd.f32 %v2526_v53, %v2525_v31  ;;  %v2087_v33 = vadd.f32 %v2599_v38, %v3415_v2  ;;  %v2078_v29 = vpop.f32.mrb[55].mxu0  ;;  %v1971_v57 = vadd.f32 %v2524_v4, %v1810_v19 }
 0x1e2   : > { %2190 = vst [vmem:[%s3458_s15 + $0x20] sm:$0xff] %v2076_v26  ;;  %v2079_v50 = vadd.f32 %v2078_v29, %v3409_v7 }
 0x1e3   : > { %2193 = vst [vmem:[%s3458_s15 + $0x38] sm:$0xff] %v2087_v33  ;;  %v1974_v20 = vadd.f32 %v2527_v40, %v1813_v42  ;;  %v1837_v40 = vadd.f32 %v3374_v25, %v3391_v12 }
 0x1e4   : > { %2191 = vst [vmem:[%s3458_s15 + $0x28] sm:$0xff] %v2079_v50 }
 0x1e5   : > { %v2528_v35 = vpop.f32.mrb[56].mxu1 }
 0x1e6   : > { %v2529_v3 = vpop.f32.mrb[57].mxu1  ;;  %v2602_v44 = vpop.f32.mrb[56].mxu0 }
 0x1e7   : > { %v2530_v47 = vadd.f32 %v2529_v3, %v2528_v35  ;;  %v2100_v2 = vadd.f32 %v2602_v44, %v3427_v62  ;;  %v2531_v59 = vpop.f32.mrb[58].mxu1  ;;  %v2091_v49 = vpop.f32.mrb[57].mxu0 }
 0x1e8   : > { %v2092_v7 = vadd.f32 %v2091_v49, %v3419_v56  ;;  %v2532_v55 = vpop.f32.mrb[59].mxu1  ;;  %v2603_v21 = vpop.f32.mrb[58].mxu0 }
 0x1e9   : > { %2196 = vst [vmem:[%s3458_s15 + $0x50] sm:$0xff] %v2100_v2  ;;  %v2533_v63 = vadd.f32 %v2532_v55, %v2531_v59  ;;  %v2103_v1 = vadd.f32 %v2603_v21, %v3431_v60  ;;  %v2094_v54 = vpop.f32.mrb[59].mxu0  ;;  %v1979_v61 = vadd.f32 %v2530_v47, %v1818_v8  ;;  %v1842_v8 = vadd.f32 %v3376_v32, %v3391_v12 }
 0x1ea   : > { %2194 = vst [vmem:[%s3458_s15 + $0x40] sm:$0xff] %v2092_v7  ;;  %v2095_v11 = vadd.f32 %v2094_v54, %v3421_v48  ;;  %v1845_v7 = vadd.f32 %v3378_v46, %v3391_v12 }
 0x1eb   : > { %2197 = vst [vmem:[%s3458_s15 + $0x58] sm:$0xff] %v2103_v1  ;;  %v3497_v62 = vadd.f32 %v2533_v63, %v1821_v10 }
 0x1ec   : > { %2195 = vst [vmem:[%s3458_s15 + $0x48] sm:$0xff] %v2095_v11 }
 0x1ed   : > { %v2534_v56 = vpop.f32.mrb[60].mxu1 }
 0x1ee   : > { %v2535_v39 = vpop.f32.mrb[61].mxu1  ;;  %v2606_v0 = vpop.f32.mrb[60].mxu0 }
 0x1ef   : > { %v2536_v13 = vadd.f32 %v2535_v39, %v2534_v56  ;;  %v2116_v60 = vadd.f32 %v2606_v0, %v3447_v24  ;;  %v2537_v14 = vpop.f32.mrb[62].mxu1  ;;  %v2107_v9 = vpop.f32.mrb[61].mxu0  ;;  %v1850_v56 = vadd.f32 %v3380_v51, %v3391_v12 }
 0x1f0   : > { %v2108_v48 = vadd.f32 %v2107_v9, %v3437_v28  ;;  %v2538_v15 = vpop.f32.mrb[63].mxu1  ;;  %v2607_v36 = vpop.f32.mrb[62].mxu0 }
 0x1f1   : > { %2200 = vst [vmem:[%s3458_s15 + $0x70] sm:$0xff] %v2116_v60  ;;  %v2539_v16 = vadd.f32 %v2538_v15, %v2537_v14  ;;  %v2119_v22 = vadd.f32 %v2607_v36, %v3451_v52  ;;  %v2110_v19 = vpop.f32.mrb[63].mxu0  ;;  %v1987_v41 = vadd.f32 %v2536_v13, %v1826_v5  ;;  %v1853_v14 = vadd.f32 %v3382_v58, %v3391_v12 }
 0x1f2   : > { %2198 = vst [vmem:[%s3458_s15 + $0x60] sm:$0xff] %v2108_v48  ;;  %v2111_v4 = vadd.f32 %v2110_v19, %v3441_v30 }
 0x1f3   : > { %2201 = vst [vmem:[%s3458_s15 + $0x78] sm:$0xff] %v2119_v22  ;;  %v1990_v24 = vadd.f32 %v2539_v16, %v1829_v6 }
 0x1f4   : > { %2199 = vst [vmem:[%s3458_s15 + $0x68] sm:$0xff] %v2111_v4 }
 0x1f5   : > { %v2540_v27 = vpop.f32.mrb[64].mxu1 }
 0x1f6   : > { %v2541_v28 = vpop.f32.mrb[65].mxu1  ;;  %v2610_v31 = vpop.f32.mrb[64].mxu0 }
 0x1f7   : > { %v2542_v23 = vadd.f32 %v2541_v28, %v2540_v27  ;;  %v2132_v26 = vadd.f32 %v2610_v31, %v1971_v57  ;;  %v2543_v52 = vpop.f32.mrb[66].mxu1  ;;  %v2123_v53 = vpop.f32.mrb[65].mxu0 }
 0x1f8   : > { %v2124_v38 = vadd.f32 %v2123_v53, %v3466_v45  ;;  %v2544_v30 = vpop.f32.mrb[67].mxu1  ;;  %v2611_v42 = vpop.f32.mrb[66].mxu0 }
 0x1f9   : > { %2204 = vst [vmem:[%s3458_s15 + $0x90] sm:$0xff] %v2132_v26  ;;  %v2545_v33 = vadd.f32 %v2544_v30, %v2543_v52  ;;  %v2135_v29 = vadd.f32 %v2611_v42, %v1974_v20  ;;  %v2126_v50 = vpop.f32.mrb[67].mxu0  ;;  %v1995_v35 = vadd.f32 %v2542_v23, %v1834_v17  ;;  %v1861_v17 = vadd.f32 %v3386_v37, %v3391_v12 }
 0x1fa   : > { %2202 = vst [vmem:[%s3458_s15 + $0x80] sm:$0xff] %v2124_v38  ;;  %v2127_v34 = vadd.f32 %v2126_v50, %v3471_v43 }
 0x1fb   : > { %2205 = vst [vmem:[%s3458_s15 + $0x98] sm:$0xff] %v2135_v29  ;;  %v1998_v57 = vadd.f32 %v2545_v33, %v1837_v40 }
 0x1fc   : > { %2203 = vst [vmem:[%s3458_s15 + $0x88] sm:$0xff] %v2127_v34 }
 0x1fd   : > { %v2546_v3 = vpop.f32.mrb[68].mxu1 }
 0x1fe   : > { %v2547_v44 = vpop.f32.mrb[69].mxu1  ;;  %v2614_v45 = vpop.f32.mrb[68].mxu0 }
 0x1ff   : > { %v2548_v25 = vadd.f32 %v2547_v44, %v2546_v3  ;;  %v2148_v47 = vadd.f32 %v2614_v45, %v1987_v41  ;;  %v2549_v20 = vpop.f32.mrb[70].mxu1  ;;  %v2139_v2 = vpop.f32.mrb[69].mxu0  ;;  %v1858_v41 = vadd.f32 %v3384_v18, %v3391_v12 }
 0x200   : > { %v2140_v59 = vadd.f32 %v2139_v2, %v1979_v61  ;;  %v2550_v49 = vpop.f32.mrb[71].mxu1  ;;  %v2615_v43 = vpop.f32.mrb[70].mxu0 }
 0x201   : > { %2208 = vst [vmem:[%s3458_s15 + $0xb0] sm:$0xff] %v2148_v47  ;;  %v2551_v55 = vadd.f32 %v2550_v49, %v2549_v20  ;;  %v2151_v21 = vadd.f32 %v2615_v43, %v1990_v24  ;;  %v2142_v10 = vpop.f32.mrb[71].mxu0  ;;  %v2003_v63 = vadd.f32 %v2548_v25, %v1842_v8 }
 0x202   : > { %2206 = vst [vmem:[%s3458_s15 + $0xa0] sm:$0xff] %v2140_v59  ;;  %v2143_v32 = vadd.f32 %v2142_v10, %v3497_v62 }
 0x203   : > { %2209 = vst [vmem:[%s3458_s15 + $0xb8] sm:$0xff] %v2151_v21  ;;  %v2006_v1 = vadd.f32 %v2551_v55, %v1845_v7 }
 0x204   : > { %2207 = vst [vmem:[%s3458_s15 + $0xa8] sm:$0xff] %v2143_v32 }
 0x205   : > { %v2552_v54 = vpop.f32.mrb[72].mxu1 }
 0x206   : > { %v2553_v11 = vpop.f32.mrb[73].mxu1  ;;  %v2618_v61 = vpop.f32.mrb[72].mxu0 }
 0x207   : > { %v2554_v46 = vadd.f32 %v2553_v11, %v2552_v54  ;;  %v2164_v39 = vadd.f32 %v2618_v61, %v2003_v63  ;;  %v2555_v0 = vpop.f32.mrb[74].mxu1  ;;  %v2155_v5 = vpop.f32.mrb[73].mxu0 }
 0x208   : > { %v2156_v13 = vadd.f32 %v2155_v5, %v1995_v35  ;;  %v2556_v60 = vpop.f32.mrb[75].mxu1  ;;  %v2619_v62 = vpop.f32.mrb[74].mxu0 }
 0x209   : > { %2212 = vst [vmem:[%s3458_s15 + $0xd0] sm:$0xff] %v2164_v39  ;;  %v2557_v9 = vadd.f32 %v2556_v60, %v2555_v0  ;;  %v2167_v48 = vadd.f32 %v2619_v62, %v2006_v1  ;;  %v2158_v15 = vpop.f32.mrb[75].mxu0  ;;  %v2011_v36 = vadd.f32 %v2554_v46, %v1850_v56 }
 0x20a   : > { %2210 = vst [vmem:[%s3458_s15 + $0xc0] sm:$0xff] %v2156_v13  ;;  %v2159_v6 = vadd.f32 %v2158_v15, %v1998_v57 }
 0x20b   : > { %2213 = vst [vmem:[%s3458_s15 + $0xd8] sm:$0xff] %v2167_v48  ;;  %v2014_v51 = vadd.f32 %v2557_v9, %v1853_v14 }
 0x20c   : > { %2211 = vst [vmem:[%s3458_s15 + $0xc8] sm:$0xff] %v2159_v6 }
 0x20d   : > { %v2558_v16 = vpop.f32.mrb[76].mxu1 }
 0x20e   : > { %v2559_v22 = vpop.f32.mrb[77].mxu1  ;;  %v2622_v19 = vpop.f32.mrb[76].mxu0 }
 0x20f   : > { %v2560_v58 = vadd.f32 %v2559_v22, %v2558_v16  ;;  %v2561_v4 = vpop.f32.mrb[78].mxu1  ;;  %v2171_v24 = vpop.f32.mrb[77].mxu0 }
 0x210   : > { %v2172_v27 = vadd.f32 %v2171_v24, %v2011_v36  ;;  %v2562_v28 = vpop.f32.mrb[79].mxu1  ;;  %v2623_v31 = vpop.f32.mrb[78].mxu0 }
 0x211   : > { %v2019_v23 = vadd.f32 %v2560_v58, %v1858_v41  ;;  %v2563_v26 = vadd.f32 %v2562_v28, %v2561_v4  ;;  %v2174_v52 = vpop.f32.mrb[79].mxu0 }
 0x212   : > { %2214 = vst [vmem:[%s3458_s15 + $0xe0] sm:$0xff] %v2172_v27  ;;  %v2175_v53 = vadd.f32 %v2174_v52, %v2014_v51 }
 0x213   : > { %v2180_v38 = vadd.f32 %v2622_v19, %v2019_v23  ;;  %v2022_v30 = vadd.f32 %v2563_v26, %v1861_v17 }
 0x214   : > { %2215 = vst [vmem:[%s3458_s15 + $0xe8] sm:$0xff] %v2175_v53 }
 0x215   : > { %2216 = vst [vmem:[%s3458_s15 + $0xf0] sm:$0xff] %v2180_v38  ;;  %v2183_v18 = vadd.f32 %v2623_v31, %v2022_v30 }
 0x217   : > { %2217 = vst [vmem:[%s3458_s15 + $0xf8] sm:$0xff] %v2183_v18 }
 0x218 PF: > { %s15_s18 = sadd.s32 1, %s2692_s18  }
 0x219   : > { %p12_p4 = scmp.ge.s32.totalorder %s15_s18, 4  }
 0x21b   :  { %14 = sbr.rel (!%p12_p4) target bundleno = 1 (0x1), region = 73 }

</bundles_post_ra>
